<compile_context>
chip_gen: v7x
topology: tpu7x:2x2x1
jax: 0.10.0
libtpu: 0.0.40
codegen_flags: <defaults>
</compile_context>

<pallas_src>
import jax
import jax.numpy as jnp
import numpy as np
from jax import lax
from jax.experimental import pallas as pl
from jax.experimental.pallas import tpu as pltpu

# ---- static configuration (small, deterministic demo shapes) -----------------
N = 2           # batch
C_IN = 24       # in_channels
C_RED = 8       # reduce_dim
C_OUT = 32      # out_channels (!= C_IN -> downsampling variant of the block)
H = W = 16      # input spatial size
K = 3           # kernel_size of the middle conv
PAD = 1         # padding of the middle conv
HH = WH = H // 2      # phase spatial size
HO = WO = H // 2      # output spatial size (stride 2, pad 1, k 3)
EPS = 1e-5

PHB = N * HH            # rows per phase block        (16)
ROWS1 = 4 * N * HH      # stage-1 rows (p, n, hh)     (64)
ROWS2 = N * HO          # stage-2/3 rows (n, ho)      (16)
LANES1 = WH * C_RED     # stage-1/2 lane width        (64)
NPIX1 = 4 * N * HH * WH  # pixels entering stage-1 BN (512)
NPIX2 = N * HO * WO      # pixels entering stage-2/3 BN (128)


def bottleneck_kernel(x_ref, w1_ref, w2b_ref, w3_ref, wsc_ref,
                      foldr_ref, foldo_ref,
                      g1_ref, b1_ref, g2_ref, b2_ref,
                      g3_ref, b3_ref, gsc_ref, bsc_ref,
                      out_ref):
    f32 = jnp.float32
    ones1 = jnp.ones((8, ROWS1), f32)   # column-sum LHS, stage 1 (8 identical rows)
    ones2 = jnp.ones((8, ROWS2), f32)   # column-sum LHS, stages 2/3

    def bn_relu(y, ones_lhs, fold_ref, g_ref, b_ref, inv_n):
        # Training-mode BN (biased variance) + ReLU on a lane-dense activation whose
        # channels repeat over lane groups.  Column sums and the per-channel
        # fold/broadcast both run on the MXU (review: ones-matmul BN stats).
        s1 = jnp.dot(ones_lhs, y, preferred_element_type=f32)       # (8, L)
        s2 = jnp.dot(ones_lhs, y * y, preferred_element_type=f32)   # (8, L)
        m = jnp.dot(s1, fold_ref[...], preferred_element_type=f32)[0:1] * inv_n
        ex2 = jnp.dot(s2, fold_ref[...], preferred_element_type=f32)[0:1] * inv_n
        var = ex2 - m * m        # single-pass variance; fine in f32 at these scales
        scale = g_ref[...] * lax.rsqrt(var + EPS)
        shift = b_ref[...] - m * scale
        return jnp.maximum(y * scale + shift, 0.0)

    # ---- stage 1: 1x1 reduce conv (block-diagonal over wh) + BN + ReLU -----------
    y1 = jnp.dot(x_ref[...], w1_ref[...], preferred_element_type=f32)   # (64, 64)
    y1 = bn_relu(y1, ones1, foldr_ref, g1_ref, b1_ref, 1.0 / NPIX1)

    # ---- stage 2: 3x3 stride-2 pad-1 conv: 6 per-(phase, row-shift) matmuls ------
    # kw lane shifts live in the host-built weights; the kh=0 row shift is a static
    # row slice; the top zero pad is an iota mask (review: pad-by-mask, no concats).
    row = lax.broadcasted_iota(jnp.int32, (PHB, LANES1), 0)
    top_pad = (row % HO) == 0

    def blk(p):                               # unshifted phase block, rows (n, hh=ho)
        return y1[p * PHB:(p + 1) * PHB, :]

    def blk_up(p):                            # row-shifted block, rows (n, hh=ho-1)
        s = y1[p * PHB - 1:(p + 1) * PHB - 1, :]
        return jnp.where(top_pad, 0.0, s)

    y2 = (jnp.dot(blk(0), w2b_ref[0], preferred_element_type=f32)
          + jnp.dot(blk(1), w2b_ref[1], preferred_element_type=f32)
          + jnp.dot(blk(2), w2b_ref[2], preferred_element_type=f32)
          + jnp.dot(blk(3), w2b_ref[3], preferred_element_type=f32)
          + jnp.dot(blk_up(2), w2b_ref[4], preferred_element_type=f32)
          + jnp.dot(blk_up(3), w2b_ref[5], preferred_element_type=f32))  # (16, 64)
    y2 = bn_relu(y2, ones2, foldr_ref, g2_ref, b2_ref, 1.0 / NPIX2)

    # ---- stage 3: 1x1 expand (+BN+ReLU) and 1x1 s2 shortcut (+BN+ReLU), then add --
    y3 = jnp.dot(y2, w3_ref[...], preferred_element_type=f32)            # (16, 256)
    y3 = bn_relu(y3, ones2, foldo_ref, g3_ref, b3_ref, 1.0 / NPIX2)
    # shortcut taps = even/even phase = rows [0, ROWS2) of the input; re-read from
    # the ref at point of use so the full input value is never kept live (review).
    sc = jnp.dot(x_ref[0:ROWS2, :], wsc_ref[...], preferred_element_type=f32)
    sc = bn_relu(sc, ones2, foldo_ref, gsc_ref, bsc_ref, 1.0 / NPIX2)

    # lane-dense (16, 256) output: full-lane stores, no in-kernel reshape (review).
    out_ref[...] = y3 + sc


@jax.jit
def bottleneck_forward(x_nchw, params):
    # NCHW -> NHWC -> (row-parity, col-parity, n, hh, wh, c) -> lane-dense 2-D slab.
    # TODO(synk): at real shapes fold this space-to-depth (and the final NHWC->NCHW
    # transpose) into the kernel via a phase grid axis / index_map instead of paying
    # an extra HBM round trip in the wrapper.
    x = jnp.transpose(x_nchw, (0, 2, 3, 1))
    x_ph = x.reshape(N, HH, 2, WH, 2, C_IN).transpose(2, 4, 0, 1, 3, 5)
    x2d = x_ph.reshape(ROWS1, WH * C_IN)                      # (64, 192)

    vmem = pl.BlockSpec(memory_space=pltpu.MemorySpace.VMEM)
    args = (x2d, params["w1big"], params["w2b"], params["w3big"], params["wscbig"],
            params["fold_r"], params["fold_o"],
            params["g1t"], params["b1t"], params["g2t"], params["b2t"],
            params["g3t"], params["b3t"], params["gsct"], params["bsct"])

    out2d = pl.pallas_call(
        bottleneck_kernel,
        out_shape=jax.ShapeDtypeStruct((N * HO, WO * C_OUT), jnp.float32),
        in_specs=[vmem] * len(args),
        out_specs=vmem,
    )(*args)
    out = out2d.reshape(N, HO, WO, C_OUT)
    return jnp.transpose(out, (0, 3, 1, 2))                   # back to NCHW


def init_params(key):
    k1, k2, k3, k4 = jax.random.split(key, 4)
    scale = 0.1
    # PyTorch conv weight layout: OIHW
    w1 = jax.random.normal(k1, (C_RED, C_IN, 1, 1), jnp.float32) * scale
    w2 = jax.random.normal(k2, (C_RED, C_RED, K, K), jnp.float32) * scale
    w3 = jax.random.normal(k3, (C_OUT, C_RED, 1, 1), jnp.float32) * scale
    wsc = jax.random.normal(k4, (C_OUT, C_IN, 1, 1), jnp.float32) * scale

    w1n = np.asarray(w1)[:, :, 0, 0]       # (C_RED, C_IN)
    w2n = np.asarray(w2)                   # (C_RED, C_RED, K, K)
    w3n = np.asarray(w3)[:, :, 0, 0]       # (C_OUT, C_RED)
    wscn = np.asarray(wsc)[:, :, 0, 0]     # (C_OUT, C_IN)

    # stage-1 1x1 reduce: block-diagonal over wh: lane (wh,ci) -> lane (wh,cr)
    w1big = np.zeros((WH * C_IN, WH * C_RED), np.float32)
    for wh in range(WH):
        w1big[wh * C_IN:(wh + 1) * C_IN, wh * C_RED:(wh + 1) * C_RED] = w1n.T

    # stage-2 3x3 s2 conv: 6 per-(phase, row-shift) lane-mapped weights.
    # block order: (kh=1,kw=1)->p0, (kh=1,kw=0/2)->p1, (kh=2,kw=1)->p2,
    #              (kh=2,kw=0/2)->p3, (kh=0,kw=1)->p2 shifted, (kh=0,kw=0/2)->p3 shifted
    spec = [(1, (1,)), (1, (0, 2)), (2, (1,)), (2, (0, 2)), (0, (1,)), (0, (0, 2))]
    w2b = np.zeros((6, WH * C_RED, WO * C_RED), np.float32)
    for b, (kh, kws) in enumerate(spec):
        for kw in kws:
            d = 1 if kw == 0 else 0          # lane map: wh = wo - d (wo=0, kw=0 -> pad)
            for wo in range(WO):
                wh = wo - d
                if wh < 0:
                    continue
                w2b[b, wh * C_RED:(wh + 1) * C_RED,
                       wo * C_RED:(wo + 1) * C_RED] += w2n[:, :, kh, kw].T

    # stage-3 expand and shortcut: block-diagonal over wo
    w3big = np.zeros((WO * C_RED, WO * C_OUT), np.float32)
    wscbig = np.zeros((WO * C_IN, WO * C_OUT), np.float32)
    for wo in range(WO):
        w3big[wo * C_RED:(wo + 1) * C_RED, wo * C_OUT:(wo + 1) * C_OUT] = w3n.T
        wscbig[wo * C_IN:(wo + 1) * C_IN, wo * C_OUT:(wo + 1) * C_OUT] = wscn.T

    # BN fold/broadcast matrices (sum per-channel over the lane groups and broadcast
    # back to every lane group) — the 1/npix scaling is a compile-time constant.
    fold_r = np.tile(np.eye(C_RED, dtype=np.float32), (WH, WO))     # (64, 64)
    fold_o = np.tile(np.eye(C_OUT, dtype=np.float32), (WO, WO))     # (256, 256)

    tile_r = lambda v: np.tile(v, (1, WH)).astype(np.float32)       # (1, WH*C_RED)
    tile_o = lambda v: np.tile(v, (1, WO)).astype(np.float32)       # (1, WO*C_OUT)
    ones_c = lambda c: np.ones((1, c), np.float32)                  # BN gamma default
    zeros_c = lambda c: np.zeros((1, c), np.float32)                # BN beta default

    return dict(
        # raw weights / BN params for the pure-JAX reference
        w1=w1, w2=w2, w3=w3, wsc=wsc,
        g1=jnp.ones((1, C_RED)), b1=jnp.zeros((1, C_RED)),
        g2=jnp.ones((1, C_RED)), b2=jnp.zeros((1, C_RED)),
        g3=jnp.ones((1, C_OUT)), b3=jnp.zeros((1, C_OUT)),
        gsc=jnp.ones((1, C_OUT)), bsc=jnp.zeros((1, C_OUT)),
        # kernel-side layouts (all weight reshaping done once here, not in-kernel)
        w1big=jnp.asarray(w1big), w2b=jnp.asarray(w2b),
        w3big=jnp.asarray(w3big), wscbig=jnp.asarray(wscbig),
        fold_r=jnp.asarray(fold_r), fold_o=jnp.asarray(fold_o),
        g1t=jnp.asarray(tile_r(ones_c(C_RED))), b1t=jnp.asarray(tile_r(zeros_c(C_RED))),
        g2t=jnp.asarray(tile_r(ones_c(C_RED))), b2t=jnp.asarray(tile_r(zeros_c(C_RED))),
        g3t=jnp.asarray(tile_o(ones_c(C_OUT))), b3t=jnp.asarray(tile_o(zeros_c(C_OUT))),
        gsct=jnp.asarray(tile_o(ones_c(C_OUT))), bsct=jnp.asarray(tile_o(zeros_c(C_OUT))),
    )


@jax.jit
def ref_forward(x, p):
    """Pure-JAX reference mirroring the PyTorch module (NCHW, train-mode BN)."""
    def conv(x, w, s, pad):
        return lax.conv_general_dilated(
            x, w, (s, s), ((pad, pad), (pad, pad)),
            dimension_numbers=("NCHW", "OIHW", "NCHW"),
            precision=lax.Precision.HIGHEST)

    def bn_relu(x, g, b):
        m = x.mean(axis=(0, 2, 3), keepdims=True)
        v = ((x - m) ** 2).mean(axis=(0, 2, 3), keepdims=True)
        y = (x - m) * lax.rsqrt(v + EPS) * g.reshape(1, -1, 1, 1) + b.reshape(1, -1, 1, 1)
        return jnp.maximum(y, 0.0)

    h = bn_relu(conv(x, p["w1"], 1, 0), p["g1"], p["b1"])
    h = bn_relu(conv(h, p["w2"], 2, PAD), p["g2"], p["b2"])
    h = bn_relu(conv(h, p["w3"], 1, 0), p["g3"], p["b3"])
    s = bn_relu(conv(x, p["wsc"], 2, 0), p["gsc"], p["bsc"])
    return h + s


if __name__ == "__main__":
    key = jax.random.PRNGKey(0)
    kx, kp = jax.random.split(key)
    x = jax.random.normal(kx, (N, C_IN, H, W), jnp.float32)
    params = init_params(kp)

    out = jax.block_until_ready(bottleneck_forward(x, params))
    ref = jax.block_until_ready(ref_forward(x, params))

    assert out.shape == ref.shape == (N, C_OUT, HO, WO), (out.shape, ref.shape)
    max_err = float(jnp.max(jnp.abs(out - ref)))
    assert max_err < 1e-3, f"kernel/reference mismatch: max abs err = {max_err}"
    print("KERNEL_OK")
</pallas_src>

<mosaic_0001>
module attributes {stable_mosaic.version = 11 : i64} {
  func.func @bottleneck_kernel(%arg0: memref<64x192xf32, #tpu.memory_space<vmem>>, %arg1: memref<192x64xf32, #tpu.memory_space<vmem>>, %arg2: memref<6x64x64xf32, #tpu.memory_space<vmem>>, %arg3: memref<64x256xf32, #tpu.memory_space<vmem>>, %arg4: memref<192x256xf32, #tpu.memory_space<vmem>>, %arg5: memref<64x64xf32, #tpu.memory_space<vmem>>, %arg6: memref<256x256xf32, #tpu.memory_space<vmem>>, %arg7: memref<1x64xf32, #tpu.memory_space<vmem>>, %arg8: memref<1x64xf32, #tpu.memory_space<vmem>>, %arg9: memref<1x64xf32, #tpu.memory_space<vmem>>, %arg10: memref<1x64xf32, #tpu.memory_space<vmem>>, %arg11: memref<1x256xf32, #tpu.memory_space<vmem>>, %arg12: memref<1x256xf32, #tpu.memory_space<vmem>>, %arg13: memref<1x256xf32, #tpu.memory_space<vmem>>, %arg14: memref<1x256xf32, #tpu.memory_space<vmem>>, %arg15: memref<16x256xf32, #tpu.memory_space<vmem>>) attributes {dimension_semantics = [], scalar_prefetch = 0 : i64, scratch_operands = 0 : i64, tpu.core_type = #tpu.core_type<tc>} {
    %cst = arith.constant 1.000000e+00 : f32
    %0 = vector.broadcast %cst : f32 to vector<8x64xf32>
    %cst_0 = arith.constant 1.000000e+00 : f32
    %1 = vector.broadcast %cst_0 : f32 to vector<8x16xf32>
    %c0 = arith.constant 0 : index
    %c0_1 = arith.constant 0 : index
    %2 = vector.load %arg0[%c0, %c0_1] : memref<64x192xf32, #tpu.memory_space<vmem>>, vector<64x192xf32>
    %c0_2 = arith.constant 0 : index
    %c0_3 = arith.constant 0 : index
    %3 = vector.load %arg1[%c0_2, %c0_3] : memref<192x64xf32, #tpu.memory_space<vmem>>, vector<192x64xf32>
    %cst_4 = arith.constant dense<0.000000e+00> : vector<64x64xf32>
    %4 = tpu.matmul %2, %3, %cst_4 {dimension_numbers = #tpu.dot_dimension_numbers<[1], [0], [0], [1], [0, 0, 1, 1], [], []>} : vector<64x192xf32>, vector<192x64xf32>, vector<64x64xf32> -> vector<64x64xf32>
    %cst_5 = arith.constant dense<0.000000e+00> : vector<8x64xf32>
    %5 = tpu.matmul %0, %4, %cst_5 {dimension_numbers = #tpu.dot_dimension_numbers<[1], [0], [0], [1], [0, 0, 1, 1], [], []>} : vector<8x64xf32>, vector<64x64xf32>, vector<8x64xf32> -> vector<8x64xf32>
    %6 = arith.mulf %4, %4 : vector<64x64xf32>
    %cst_6 = arith.constant dense<0.000000e+00> : vector<8x64xf32>
    %7 = tpu.matmul %0, %6, %cst_6 {dimension_numbers = #tpu.dot_dimension_numbers<[1], [0], [0], [1], [0, 0, 1, 1], [], []>} : vector<8x64xf32>, vector<64x64xf32>, vector<8x64xf32> -> vector<8x64xf32>
    %c0_7 = arith.constant 0 : index
    %c0_8 = arith.constant 0 : index
    %8 = vector.load %arg5[%c0_7, %c0_8] : memref<64x64xf32, #tpu.memory_space<vmem>>, vector<64x64xf32>
    %cst_9 = arith.constant dense<0.000000e+00> : vector<8x64xf32>
    %9 = tpu.matmul %5, %8, %cst_9 {dimension_numbers = #tpu.dot_dimension_numbers<[1], [0], [0], [1], [0, 0, 1, 1], [], []>} : vector<8x64xf32>, vector<64x64xf32>, vector<8x64xf32> -> vector<8x64xf32>
    %10 = vector.extract_strided_slice %9 {offsets = [0, 0], sizes = [1, 64], strides = [1, 1]} : vector<8x64xf32> to vector<1x64xf32>
    %cst_10 = arith.constant 0.001953125 : f32
    %11 = vector.broadcast %cst_10 : f32 to vector<1x64xf32>
    %12 = arith.mulf %10, %11 : vector<1x64xf32>
    %c0_11 = arith.constant 0 : index
    %c0_12 = arith.constant 0 : index
    %13 = vector.load %arg5[%c0_11, %c0_12] : memref<64x64xf32, #tpu.memory_space<vmem>>, vector<64x64xf32>
    %cst_13 = arith.constant dense<0.000000e+00> : vector<8x64xf32>
    %14 = tpu.matmul %7, %13, %cst_13 {dimension_numbers = #tpu.dot_dimension_numbers<[1], [0], [0], [1], [0, 0, 1, 1], [], []>} : vector<8x64xf32>, vector<64x64xf32>, vector<8x64xf32> -> vector<8x64xf32>
    %15 = vector.extract_strided_slice %14 {offsets = [0, 0], sizes = [1, 64], strides = [1, 1]} : vector<8x64xf32> to vector<1x64xf32>
    %cst_14 = arith.constant 0.001953125 : f32
    %16 = vector.broadcast %cst_14 : f32 to vector<1x64xf32>
    %17 = arith.mulf %15, %16 : vector<1x64xf32>
    %18 = arith.mulf %12, %12 : vector<1x64xf32>
    %19 = arith.subf %17, %18 : vector<1x64xf32>
    %c0_15 = arith.constant 0 : index
    %c0_16 = arith.constant 0 : index
    %20 = vector.load %arg7[%c0_15, %c0_16] : memref<1x64xf32, #tpu.memory_space<vmem>>, vector<1x64xf32>
    %cst_17 = arith.constant 9.99999974E-6 : f32
    %21 = vector.broadcast %cst_17 : f32 to vector<1x64xf32>
    %22 = arith.addf %19, %21 : vector<1x64xf32>
    %23 = math.rsqrt %22 : vector<1x64xf32>
    %24 = arith.mulf %20, %23 : vector<1x64xf32>
    %c0_18 = arith.constant 0 : index
    %c0_19 = arith.constant 0 : index
    %25 = vector.load %arg8[%c0_18, %c0_19] : memref<1x64xf32, #tpu.memory_space<vmem>>, vector<1x64xf32>
    %26 = arith.mulf %12, %24 : vector<1x64xf32>
    %27 = arith.subf %25, %26 : vector<1x64xf32>
    %28 = vector.broadcast %24 : vector<1x64xf32> to vector<64x64xf32>
    %29 = arith.mulf %4, %28 : vector<64x64xf32>
    %30 = vector.broadcast %27 : vector<1x64xf32> to vector<64x64xf32>
    %31 = arith.addf %29, %30 : vector<64x64xf32>
    %cst_20 = arith.constant 0.000000e+00 : f32
    %32 = vector.broadcast %cst_20 : f32 to vector<64x64xf32>
    %33 = arith.maximumf %31, %32 : vector<64x64xf32>
    %34 = tpu.iota {dimensions = array<i32: 0>} : vector<16x64xi32>
    %c8_i32 = arith.constant 8 : i32
    %c0_i32 = arith.constant 0 : i32
    %35 = arith.cmpi eq, %c8_i32, %c0_i32 : i32
    %c1_i32 = arith.constant 1 : i32
    %36 = arith.select %35, %c1_i32, %c8_i32 : i32
    %37 = vector.broadcast %36 : i32 to vector<16x64xi32>
    %38 = arith.remsi %34, %37 : vector<16x64xi32>
    %c0_i32_21 = arith.constant 0 : i32
    %39 = vector.broadcast %c0_i32_21 : i32 to vector<16x64xi32>
    %40 = arith.cmpi ne, %38, %39 : vector<16x64xi32>
    %c0_i32_22 = arith.constant 0 : i32
    %41 = vector.broadcast %c0_i32_22 : i32 to vector<16x64xi32>
    %42 = arith.cmpi slt, %38, %41 : vector<16x64xi32>
    %c0_i32_23 = arith.constant 0 : i32
    %43 = arith.cmpi slt, %36, %c0_i32_23 : i32
    %44 = vector.broadcast %43 : i1 to vector<16x64xi1>
    %45 = vector.broadcast %44 : vector<16x64xi1> to vector<16x64xi1>
    %46 = arith.xori %42, %45 : vector<16x64xi1>
    %47 = arith.andi %46, %40 : vector<16x64xi1>
    %48 = vector.broadcast %36 : i32 to vector<16x64xi32>
    %49 = arith.addi %38, %48 : vector<16x64xi32>
    %50 = arith.select %47, %49, %38 : vector<16x64xi1>, vector<16x64xi32>
    %c0_i32_24 = arith.constant 0 : i32
    %51 = vector.broadcast %c0_i32_24 : i32 to vector<16x64xi32>
    %52 = arith.cmpi eq, %50, %51 : vector<16x64xi32>
    %53 = vector.extract_strided_slice %33 {offsets = [0, 0], sizes = [16, 64], strides = [1, 1]} : vector<64x64xf32> to vector<16x64xf32>
    %c0_25 = arith.constant 0 : index
    %c0_26 = arith.constant 0 : index
    %c0_27 = arith.constant 0 : index
    %54 = vector.load %arg2[%c0_25, %c0_26, %c0_27] : memref<6x64x64xf32, #tpu.memory_space<vmem>>, vector<1x64x64xf32>
    %55 = vector.shape_cast %54 : vector<1x64x64xf32> to vector<64x64xf32>
    %cst_28 = arith.constant dense<0.000000e+00> : vector<16x64xf32>
    %56 = tpu.matmul %53, %55, %cst_28 {dimension_numbers = #tpu.dot_dimension_numbers<[1], [0], [0], [1], [0, 0, 1, 1], [], []>} : vector<16x64xf32>, vector<64x64xf32>, vector<16x64xf32> -> vector<16x64xf32>
    %57 = vector.extract_strided_slice %33 {offsets = [16, 0], sizes = [16, 64], strides = [1, 1]} : vector<64x64xf32> to vector<16x64xf32>
    %c1 = arith.constant 1 : index
    %c0_29 = arith.constant 0 : index
    %c0_30 = arith.constant 0 : index
    %58 = vector.load %arg2[%c1, %c0_29, %c0_30] : memref<6x64x64xf32, #tpu.memory_space<vmem>>, vector<1x64x64xf32>
    %59 = vector.shape_cast %58 : vector<1x64x64xf32> to vector<64x64xf32>
    %cst_31 = arith.constant dense<0.000000e+00> : vector<16x64xf32>
    %60 = tpu.matmul %57, %59, %cst_31 {dimension_numbers = #tpu.dot_dimension_numbers<[1], [0], [0], [1], [0, 0, 1, 1], [], []>} : vector<16x64xf32>, vector<64x64xf32>, vector<16x64xf32> -> vector<16x64xf32>
    %61 = arith.addf %56, %60 : vector<16x64xf32>
    %62 = vector.extract_strided_slice %33 {offsets = [32, 0], sizes = [16, 64], strides = [1, 1]} : vector<64x64xf32> to vector<16x64xf32>
    %c2 = arith.constant 2 : index
    %c0_32 = arith.constant 0 : index
    %c0_33 = arith.constant 0 : index
    %63 = vector.load %arg2[%c2, %c0_32, %c0_33] : memref<6x64x64xf32, #tpu.memory_space<vmem>>, vector<1x64x64xf32>
    %64 = vector.shape_cast %63 : vector<1x64x64xf32> to vector<64x64xf32>
    %cst_34 = arith.constant dense<0.000000e+00> : vector<16x64xf32>
    %65 = tpu.matmul %62, %64, %cst_34 {dimension_numbers = #tpu.dot_dimension_numbers<[1], [0], [0], [1], [0, 0, 1, 1], [], []>} : vector<16x64xf32>, vector<64x64xf32>, vector<16x64xf32> -> vector<16x64xf32>
    %66 = arith.addf %61, %65 : vector<16x64xf32>
    %67 = vector.extract_strided_slice %33 {offsets = [48, 0], sizes = [16, 64], strides = [1, 1]} : vector<64x64xf32> to vector<16x64xf32>
    %c3 = arith.constant 3 : index
    %c0_35 = arith.constant 0 : index
    %c0_36 = arith.constant 0 : index
    %68 = vector.load %arg2[%c3, %c0_35, %c0_36] : memref<6x64x64xf32, #tpu.memory_space<vmem>>, vector<1x64x64xf32>
    %69 = vector.shape_cast %68 : vector<1x64x64xf32> to vector<64x64xf32>
    %cst_37 = arith.constant dense<0.000000e+00> : vector<16x64xf32>
    %70 = tpu.matmul %67, %69, %cst_37 {dimension_numbers = #tpu.dot_dimension_numbers<[1], [0], [0], [1], [0, 0, 1, 1], [], []>} : vector<16x64xf32>, vector<64x64xf32>, vector<16x64xf32> -> vector<16x64xf32>
    %71 = arith.addf %66, %70 : vector<16x64xf32>
    %72 = vector.extract_strided_slice %33 {offsets = [31, 0], sizes = [16, 64], strides = [1, 1]} : vector<64x64xf32> to vector<16x64xf32>
    %cst_38 = arith.constant 0.000000e+00 : f32
    %73 = vector.broadcast %cst_38 : f32 to vector<16x64xf32>
    %74 = arith.select %52, %73, %72 : vector<16x64xi1>, vector<16x64xf32>
    %c4 = arith.constant 4 : index
    %c0_39 = arith.constant 0 : index
    %c0_40 = arith.constant 0 : index
    %75 = vector.load %arg2[%c4, %c0_39, %c0_40] : memref<6x64x64xf32, #tpu.memory_space<vmem>>, vector<1x64x64xf32>
    %76 = vector.shape_cast %75 : vector<1x64x64xf32> to vector<64x64xf32>
    %cst_41 = arith.constant dense<0.000000e+00> : vector<16x64xf32>
    %77 = tpu.matmul %74, %76, %cst_41 {dimension_numbers = #tpu.dot_dimension_numbers<[1], [0], [0], [1], [0, 0, 1, 1], [], []>} : vector<16x64xf32>, vector<64x64xf32>, vector<16x64xf32> -> vector<16x64xf32>
    %78 = arith.addf %71, %77 : vector<16x64xf32>
    %79 = vector.extract_strided_slice %33 {offsets = [47, 0], sizes = [16, 64], strides = [1, 1]} : vector<64x64xf32> to vector<16x64xf32>
    %cst_42 = arith.constant 0.000000e+00 : f32
    %80 = vector.broadcast %cst_42 : f32 to vector<16x64xf32>
    %81 = arith.select %52, %80, %79 : vector<16x64xi1>, vector<16x64xf32>
    %c5 = arith.constant 5 : index
    %c0_43 = arith.constant 0 : index
    %c0_44 = arith.constant 0 : index
    %82 = vector.load %arg2[%c5, %c0_43, %c0_44] : memref<6x64x64xf32, #tpu.memory_space<vmem>>, vector<1x64x64xf32>
    %83 = vector.shape_cast %82 : vector<1x64x64xf32> to vector<64x64xf32>
    %cst_45 = arith.constant dense<0.000000e+00> : vector<16x64xf32>
    %84 = tpu.matmul %81, %83, %cst_45 {dimension_numbers = #tpu.dot_dimension_numbers<[1], [0], [0], [1], [0, 0, 1, 1], [], []>} : vector<16x64xf32>, vector<64x64xf32>, vector<16x64xf32> -> vector<16x64xf32>
    %85 = arith.addf %78, %84 : vector<16x64xf32>
    %cst_46 = arith.constant dense<0.000000e+00> : vector<8x64xf32>
    %86 = tpu.matmul %1, %85, %cst_46 {dimension_numbers = #tpu.dot_dimension_numbers<[1], [0], [0], [1], [0, 0, 1, 1], [], []>} : vector<8x16xf32>, vector<16x64xf32>, vector<8x64xf32> -> vector<8x64xf32>
    %87 = arith.mulf %85, %85 : vector<16x64xf32>
    %cst_47 = arith.constant dense<0.000000e+00> : vector<8x64xf32>
    %88 = tpu.matmul %1, %87, %cst_47 {dimension_numbers = #tpu.dot_dimension_numbers<[1], [0], [0], [1], [0, 0, 1, 1], [], []>} : vector<8x16xf32>, vector<16x64xf32>, vector<8x64xf32> -> vector<8x64xf32>
    %c0_48 = arith.constant 0 : index
    %c0_49 = arith.constant 0 : index
    %89 = vector.load %arg5[%c0_48, %c0_49] : memref<64x64xf32, #tpu.memory_space<vmem>>, vector<64x64xf32>
    %cst_50 = arith.constant dense<0.000000e+00> : vector<8x64xf32>
    %90 = tpu.matmul %86, %89, %cst_50 {dimension_numbers = #tpu.dot_dimension_numbers<[1], [0], [0], [1], [0, 0, 1, 1], [], []>} : vector<8x64xf32>, vector<64x64xf32>, vector<8x64xf32> -> vector<8x64xf32>
    %91 = vector.extract_strided_slice %90 {offsets = [0, 0], sizes = [1, 64], strides = [1, 1]} : vector<8x64xf32> to vector<1x64xf32>
    %cst_51 = arith.constant 7.812500e-03 : f32
    %92 = vector.broadcast %cst_51 : f32 to vector<1x64xf32>
    %93 = arith.mulf %91, %92 : vector<1x64xf32>
    %c0_52 = arith.constant 0 : index
    %c0_53 = arith.constant 0 : index
    %94 = vector.load %arg5[%c0_52, %c0_53] : memref<64x64xf32, #tpu.memory_space<vmem>>, vector<64x64xf32>
    %cst_54 = arith.constant dense<0.000000e+00> : vector<8x64xf32>
    %95 = tpu.matmul %88, %94, %cst_54 {dimension_numbers = #tpu.dot_dimension_numbers<[1], [0], [0], [1], [0, 0, 1, 1], [], []>} : vector<8x64xf32>, vector<64x64xf32>, vector<8x64xf32> -> vector<8x64xf32>
    %96 = vector.extract_strided_slice %95 {offsets = [0, 0], sizes = [1, 64], strides = [1, 1]} : vector<8x64xf32> to vector<1x64xf32>
    %cst_55 = arith.constant 7.812500e-03 : f32
    %97 = vector.broadcast %cst_55 : f32 to vector<1x64xf32>
    %98 = arith.mulf %96, %97 : vector<1x64xf32>
    %99 = arith.mulf %93, %93 : vector<1x64xf32>
    %100 = arith.subf %98, %99 : vector<1x64xf32>
    %c0_56 = arith.constant 0 : index
    %c0_57 = arith.constant 0 : index
    %101 = vector.load %arg9[%c0_56, %c0_57] : memref<1x64xf32, #tpu.memory_space<vmem>>, vector<1x64xf32>
    %cst_58 = arith.constant 9.99999974E-6 : f32
    %102 = vector.broadcast %cst_58 : f32 to vector<1x64xf32>
    %103 = arith.addf %100, %102 : vector<1x64xf32>
    %104 = math.rsqrt %103 : vector<1x64xf32>
    %105 = arith.mulf %101, %104 : vector<1x64xf32>
    %c0_59 = arith.constant 0 : index
    %c0_60 = arith.constant 0 : index
    %106 = vector.load %arg10[%c0_59, %c0_60] : memref<1x64xf32, #tpu.memory_space<vmem>>, vector<1x64xf32>
    %107 = arith.mulf %93, %105 : vector<1x64xf32>
    %108 = arith.subf %106, %107 : vector<1x64xf32>
    %109 = vector.broadcast %105 : vector<1x64xf32> to vector<16x64xf32>
    %110 = arith.mulf %85, %109 : vector<16x64xf32>
    %111 = vector.broadcast %108 : vector<1x64xf32> to vector<16x64xf32>
    %112 = arith.addf %110, %111 : vector<16x64xf32>
    %cst_61 = arith.constant 0.000000e+00 : f32
    %113 = vector.broadcast %cst_61 : f32 to vector<16x64xf32>
    %114 = arith.maximumf %112, %113 : vector<16x64xf32>
    %c0_62 = arith.constant 0 : index
    %c0_63 = arith.constant 0 : index
    %115 = vector.load %arg3[%c0_62, %c0_63] : memref<64x256xf32, #tpu.memory_space<vmem>>, vector<64x256xf32>
    %cst_64 = arith.constant dense<0.000000e+00> : vector<16x256xf32>
    %116 = tpu.matmul %114, %115, %cst_64 {dimension_numbers = #tpu.dot_dimension_numbers<[1], [0], [0], [1], [0, 0, 1, 1], [], []>} : vector<16x64xf32>, vector<64x256xf32>, vector<16x256xf32> -> vector<16x256xf32>
    %cst_65 = arith.constant dense<0.000000e+00> : vector<8x256xf32>
    %117 = tpu.matmul %1, %116, %cst_65 {dimension_numbers = #tpu.dot_dimension_numbers<[1], [0], [0], [1], [0, 0, 1, 1], [], []>} : vector<8x16xf32>, vector<16x256xf32>, vector<8x256xf32> -> vector<8x256xf32>
    %118 = arith.mulf %116, %116 : vector<16x256xf32>
    %cst_66 = arith.constant dense<0.000000e+00> : vector<8x256xf32>
    %119 = tpu.matmul %1, %118, %cst_66 {dimension_numbers = #tpu.dot_dimension_numbers<[1], [0], [0], [1], [0, 0, 1, 1], [], []>} : vector<8x16xf32>, vector<16x256xf32>, vector<8x256xf32> -> vector<8x256xf32>
    %c0_67 = arith.constant 0 : index
    %c0_68 = arith.constant 0 : index
    %120 = vector.load %arg6[%c0_67, %c0_68] : memref<256x256xf32, #tpu.memory_space<vmem>>, vector<256x256xf32>
    %cst_69 = arith.constant dense<0.000000e+00> : vector<8x256xf32>
    %121 = tpu.matmul %117, %120, %cst_69 {dimension_numbers = #tpu.dot_dimension_numbers<[1], [0], [0], [1], [0, 0, 1, 1], [], []>} : vector<8x256xf32>, vector<256x256xf32>, vector<8x256xf32> -> vector<8x256xf32>
    %122 = vector.extract_strided_slice %121 {offsets = [0, 0], sizes = [1, 256], strides = [1, 1]} : vector<8x256xf32> to vector<1x256xf32>
    %cst_70 = arith.constant 7.812500e-03 : f32
    %123 = vector.broadcast %cst_70 : f32 to vector<1x256xf32>
    %124 = arith.mulf %122, %123 : vector<1x256xf32>
    %c0_71 = arith.constant 0 : index
    %c0_72 = arith.constant 0 : index
    %125 = vector.load %arg6[%c0_71, %c0_72] : memref<256x256xf32, #tpu.memory_space<vmem>>, vector<256x256xf32>
    %cst_73 = arith.constant dense<0.000000e+00> : vector<8x256xf32>
    %126 = tpu.matmul %119, %125, %cst_73 {dimension_numbers = #tpu.dot_dimension_numbers<[1], [0], [0], [1], [0, 0, 1, 1], [], []>} : vector<8x256xf32>, vector<256x256xf32>, vector<8x256xf32> -> vector<8x256xf32>
    %127 = vector.extract_strided_slice %126 {offsets = [0, 0], sizes = [1, 256], strides = [1, 1]} : vector<8x256xf32> to vector<1x256xf32>
    %cst_74 = arith.constant 7.812500e-03 : f32
    %128 = vector.broadcast %cst_74 : f32 to vector<1x256xf32>
    %129 = arith.mulf %127, %128 : vector<1x256xf32>
    %130 = arith.mulf %124, %124 : vector<1x256xf32>
    %131 = arith.subf %129, %130 : vector<1x256xf32>
    %c0_75 = arith.constant 0 : index
    %c0_76 = arith.constant 0 : index
    %132 = vector.load %arg11[%c0_75, %c0_76] : memref<1x256xf32, #tpu.memory_space<vmem>>, vector<1x256xf32>
    %cst_77 = arith.constant 9.99999974E-6 : f32
    %133 = vector.broadcast %cst_77 : f32 to vector<1x256xf32>
    %134 = arith.addf %131, %133 : vector<1x256xf32>
    %135 = math.rsqrt %134 : vector<1x256xf32>
    %136 = arith.mulf %132, %135 : vector<1x256xf32>
    %c0_78 = arith.constant 0 : index
    %c0_79 = arith.constant 0 : index
    %137 = vector.load %arg12[%c0_78, %c0_79] : memref<1x256xf32, #tpu.memory_space<vmem>>, vector<1x256xf32>
    %138 = arith.mulf %124, %136 : vector<1x256xf32>
    %139 = arith.subf %137, %138 : vector<1x256xf32>
    %140 = vector.broadcast %136 : vector<1x256xf32> to vector<16x256xf32>
    %141 = arith.mulf %116, %140 : vector<16x256xf32>
    %142 = vector.broadcast %139 : vector<1x256xf32> to vector<16x256xf32>
    %143 = arith.addf %141, %142 : vector<16x256xf32>
    %cst_80 = arith.constant 0.000000e+00 : f32
    %144 = vector.broadcast %cst_80 : f32 to vector<16x256xf32>
    %145 = arith.maximumf %143, %144 : vector<16x256xf32>
    %c0_81 = arith.constant 0 : index
    %c0_82 = arith.constant 0 : index
    %146 = vector.load %arg0[%c0_81, %c0_82] : memref<64x192xf32, #tpu.memory_space<vmem>>, vector<16x192xf32>
    %c0_83 = arith.constant 0 : index
    %c0_84 = arith.constant 0 : index
    %147 = vector.load %arg4[%c0_83, %c0_84] : memref<192x256xf32, #tpu.memory_space<vmem>>, vector<192x256xf32>
    %cst_85 = arith.constant dense<0.000000e+00> : vector<16x256xf32>
    %148 = tpu.matmul %146, %147, %cst_85 {dimension_numbers = #tpu.dot_dimension_numbers<[1], [0], [0], [1], [0, 0, 1, 1], [], []>} : vector<16x192xf32>, vector<192x256xf32>, vector<16x256xf32> -> vector<16x256xf32>
    %cst_86 = arith.constant dense<0.000000e+00> : vector<8x256xf32>
    %149 = tpu.matmul %1, %148, %cst_86 {dimension_numbers = #tpu.dot_dimension_numbers<[1], [0], [0], [1], [0, 0, 1, 1], [], []>} : vector<8x16xf32>, vector<16x256xf32>, vector<8x256xf32> -> vector<8x256xf32>
    %150 = arith.mulf %148, %148 : vector<16x256xf32>
    %cst_87 = arith.constant dense<0.000000e+00> : vector<8x256xf32>
    %151 = tpu.matmul %1, %150, %cst_87 {dimension_numbers = #tpu.dot_dimension_numbers<[1], [0], [0], [1], [0, 0, 1, 1], [], []>} : vector<8x16xf32>, vector<16x256xf32>, vector<8x256xf32> -> vector<8x256xf32>
    %c0_88 = arith.constant 0 : index
    %c0_89 = arith.constant 0 : index
    %152 = vector.load %arg6[%c0_88, %c0_89] : memref<256x256xf32, #tpu.memory_space<vmem>>, vector<256x256xf32>
    %cst_90 = arith.constant dense<0.000000e+00> : vector<8x256xf32>
    %153 = tpu.matmul %149, %152, %cst_90 {dimension_numbers = #tpu.dot_dimension_numbers<[1], [0], [0], [1], [0, 0, 1, 1], [], []>} : vector<8x256xf32>, vector<256x256xf32>, vector<8x256xf32> -> vector<8x256xf32>
    %154 = vector.extract_strided_slice %153 {offsets = [0, 0], sizes = [1, 256], strides = [1, 1]} : vector<8x256xf32> to vector<1x256xf32>
    %cst_91 = arith.constant 7.812500e-03 : f32
    %155 = vector.broadcast %cst_91 : f32 to vector<1x256xf32>
    %156 = arith.mulf %154, %155 : vector<1x256xf32>
    %c0_92 = arith.constant 0 : index
    %c0_93 = arith.constant 0 : index
    %157 = vector.load %arg6[%c0_92, %c0_93] : memref<256x256xf32, #tpu.memory_space<vmem>>, vector<256x256xf32>
    %cst_94 = arith.constant dense<0.000000e+00> : vector<8x256xf32>
    %158 = tpu.matmul %151, %157, %cst_94 {dimension_numbers = #tpu.dot_dimension_numbers<[1], [0], [0], [1], [0, 0, 1, 1], [], []>} : vector<8x256xf32>, vector<256x256xf32>, vector<8x256xf32> -> vector<8x256xf32>
    %159 = vector.extract_strided_slice %158 {offsets = [0, 0], sizes = [1, 256], strides = [1, 1]} : vector<8x256xf32> to vector<1x256xf32>
    %cst_95 = arith.constant 7.812500e-03 : f32
    %160 = vector.broadcast %cst_95 : f32 to vector<1x256xf32>
    %161 = arith.mulf %159, %160 : vector<1x256xf32>
    %162 = arith.mulf %156, %156 : vector<1x256xf32>
    %163 = arith.subf %161, %162 : vector<1x256xf32>
    %c0_96 = arith.constant 0 : index
    %c0_97 = arith.constant 0 : index
    %164 = vector.load %arg13[%c0_96, %c0_97] : memref<1x256xf32, #tpu.memory_space<vmem>>, vector<1x256xf32>
    %cst_98 = arith.constant 9.99999974E-6 : f32
    %165 = vector.broadcast %cst_98 : f32 to vector<1x256xf32>
    %166 = arith.addf %163, %165 : vector<1x256xf32>
    %167 = math.rsqrt %166 : vector<1x256xf32>
    %168 = arith.mulf %164, %167 : vector<1x256xf32>
    %c0_99 = arith.constant 0 : index
    %c0_100 = arith.constant 0 : index
    %169 = vector.load %arg14[%c0_99, %c0_100] : memref<1x256xf32, #tpu.memory_space<vmem>>, vector<1x256xf32>
    %170 = arith.mulf %156, %168 : vector<1x256xf32>
    %171 = arith.subf %169, %170 : vector<1x256xf32>
    %172 = vector.broadcast %168 : vector<1x256xf32> to vector<16x256xf32>
    %173 = arith.mulf %148, %172 : vector<16x256xf32>
    %174 = vector.broadcast %171 : vector<1x256xf32> to vector<16x256xf32>
    %175 = arith.addf %173, %174 : vector<16x256xf32>
    %cst_101 = arith.constant 0.000000e+00 : f32
    %176 = vector.broadcast %cst_101 : f32 to vector<16x256xf32>
    %177 = arith.maximumf %175, %176 : vector<16x256xf32>
    %178 = arith.addf %145, %177 : vector<16x256xf32>
    %c0_102 = arith.constant 0 : index
    %c0_103 = arith.constant 0 : index
    %179 = vector.load %arg15[%c0_102, %c0_103] : memref<16x256xf32, #tpu.memory_space<vmem>>, vector<16x256xf32>
    tpu.vector_store %arg15[%c0_102, %c0_103], %178 {strides = array<i32>} : memref<16x256xf32, #tpu.memory_space<vmem>>, vector<16x256xf32>,
    return
  }
}

</mosaic_0001>

<bundles_post_ra>
// kernel: bottleneck_forward.1
= control target key start
LH: loop header
LB: loop body
LE: loop exit
PB: predicated region body
PF: predicated region fallthrough
CT: control target
= control target key end

     0   :  { %v3559_v0 = vmov 0.0|0.0   ;;  %vm90_vm0 = vcmask 523264   ;;  %vm3560_vm1 = vmmov 0   ;;  %v3561_v53 = vmov 0.0   ;;  %s4878_s1 = inlined_call_operand.vmem [shape: f32[192,64], index: 1, kind: input, shape index: {}]   ;;  %s4879_s0 = inlined_call_operand.vmem [shape: f32[64,192], index: 0, kind: input, shape index: {}]   ;;  %s4880_s5 = inlined_call_operand.vmem [shape: f32[64,64], index: 5, kind: input, shape index: {}]   ;;  %s4881_s2 = inlined_call_operand.vmem [shape: f32[6,64,64], index: 2, kind: input, shape index: {}]   ;;  %s4882_s7 = inlined_call_operand.vmem [shape: f32[1,64], index: 7, kind: input, shape index: {}]   ;;  %s4883_s8 = inlined_call_operand.vmem [shape: f32[1,64], index: 8, kind: input, shape index: {}]   ;;  %s4884_s3 = inlined_call_operand.vmem [shape: f32[64,256], index: 3, kind: input, shape index: {}]   ;;  %s4885_s9 = inlined_call_operand.vmem [shape: f32[1,64], index: 9, kind: input, shape index: {}]   ;;  %s4886_s10 = inlined_call_operand.vmem [shape: f32[1,64], index: 10, kind: input, shape index: {}]   ;;  %s4887_s6 = inlined_call_operand.vmem [shape: f32[256,256], index: 6, kind: input, shape index: {}]   ;;  %s4888_s4 = inlined_call_operand.vmem [shape: f32[192,256], index: 4, kind: input, shape index: {}]   ;;  %s4889_s11 = inlined_call_operand.vmem [shape: f32[1,256], index: 11, kind: input, shape index: {}]   ;;  %s4890_s12 = inlined_call_operand.vmem [shape: f32[1,256], index: 12, kind: input, shape index: {}]   ;;  %s4891_s13 = inlined_call_operand.vmem [shape: f32[1,256], index: 13, kind: input, shape index: {}]   ;;  %s4892_s14 = inlined_call_operand.vmem [shape: f32[1,256], index: 14, kind: input, shape index: {}]   ;;  %s4893_s15 = inlined_call_operand.vmem [shape: f32[16,256], index: 15, kind: output, shape index: {}]  }
   0x1   :  { %2986 = vmatprep.subr.bf16.mxu0 %v3559_v0  ;;  %v66_v1 = vld [vmem:[%s4878_s1] sm:$0xff]  ;;  %v67_v2 = vld [vmem:[%s4878_s1 + $0x8] sm:$0xff]  ;;  %v68_v3 = vld [vmem:[%s4878_s1 + $0x10] sm:$0xff]  ;;  %3022 = vmatprep.subr.bf16.mxu1 %v3559_v0  ;;  %vm964_vm2 = vcmask 1040384   ;;  %vm1166_vm5 = vcmask 130048  }
   0x2   :  { %v2987_v4 = vpack.c.bf16 %v67_v2, %v66_v1  ;;  %v69_v5 = vld [vmem:[%s4878_s1 + $0x18] sm:$0xff]  ;;  %v70_v7 = vld [vmem:[%s4878_s1 + $0x20] sm:$0xff]  ;;  %v71_v8 = vld [vmem:[%s4878_s1 + $0x28] sm:$0xff]  ;;  %2760 = vmatprep.mubr.msk.f32.mxu1 %vm3560_vm1, %v3561_v53 }
   0x3   :  { %v2990_v6 = vpack.c.bf16 %v69_v5, %v68_v3  ;;  %v2993_v9 = vpack.c.bf16 %v71_v8, %v70_v7  ;;  %v72_v10 = vld [vmem:[%s4878_s1 + $0x30] sm:$0xff]  ;;  %v73_v11 = vld [vmem:[%s4878_s1 + $0x38] sm:$0xff]  ;;  %v51_v12 = vld [vmem:[%s4879_s0 + $0x8] sm:$0xff] }
   0x4   :  { %2988 = vmatpush1.bf16.msra.mxu0 %v2987_v4  ;;  %2548 = vmatprep.mubr.msk.f32.mxu0 %vm90_vm0, %v51_v12  ;;  %v2996_v13 = vpack.c.bf16 %v73_v11, %v72_v10  ;;  %v74_v14 = vld [vmem:[%s4878_s1 + $0x40] sm:$0xff]  ;;  %v75_v15 = vld [vmem:[%s4878_s1 + $0x48] sm:$0xff]  ;;  %v76_v17 = vld [vmem:[%s4878_s1 + $0x50] sm:$0xff] }
   0x5   :  { %2989 = vmatprep.subr.bf16.mxu0 %v3559_v0  ;;  %v2999_v16 = vpack.c.bf16 %v75_v15, %v74_v14  ;;  %v77_v18 = vld [vmem:[%s4878_s1 + $0x58] sm:$0xff]  ;;  %v78_v20 = vld [vmem:[%s4878_s1 + $0x60] sm:$0xff]  ;;  %v79_v21 = vld [vmem:[%s4878_s1 + $0x68] sm:$0xff] }
   0x6   :  { %v3002_v19 = vpack.c.bf16 %v77_v18, %v76_v17  ;;  %v3005_v22 = vpack.c.bf16 %v79_v21, %v78_v20  ;;  %v80_v23 = vld [vmem:[%s4878_s1 + $0x70] sm:$0xff]  ;;  %v81_v24 = vld [vmem:[%s4878_s1 + $0x78] sm:$0xff]  ;;  %v82_v26 = vld [vmem:[%s4878_s1 + $0x80] sm:$0xff] }
   0x7   :  { %v3008_v25 = vpack.c.bf16 %v81_v24, %v80_v23  ;;  %v83_v27 = vld [vmem:[%s4878_s1 + $0x88] sm:$0xff]  ;;  %v84_v29 = vld [vmem:[%s4878_s1 + $0x90] sm:$0xff]  ;;  %v85_v30 = vld [vmem:[%s4878_s1 + $0x98] sm:$0xff]  ;;  %v3562_v23 = vmov 1.0  }
   0x8   :  { %2991 = vmatpush1.bf16.msra.mxu0 %v2990_v6  ;;  %v3011_v28 = vpack.c.bf16 %v83_v27, %v82_v26  ;;  %v3014_v31 = vpack.c.bf16 %v85_v30, %v84_v29  ;;  %v86_v32 = vld [vmem:[%s4878_s1 + $0xa0] sm:$0xff]  ;;  %v87_v33 = vld [vmem:[%s4878_s1 + $0xa8] sm:$0xff]  ;;  %v88_v35 = vld [vmem:[%s4878_s1 + $0xb0] sm:$0xff] }
   0x9   :  { %2992 = vmatprep.subr.bf16.mxu0 %v3559_v0  ;;  %v3017_v34 = vpack.c.bf16 %v87_v33, %v86_v32  ;;  %v89_v36 = vld [vmem:[%s4878_s1 + $0xb8] sm:$0xff]  ;;  %v50_v38 = vld [vmem:[%s4879_s0] sm:$0xff]  ;;  %v52_v40 = vld [vmem:[%s4879_s0 + $0x10] sm:$0xff] }
   0xa   :  { %v3020_v37 = vpack.c.bf16 %v89_v36, %v88_v35  ;;  %v53_v39 = vld [vmem:[%s4879_s0 + $0x18] sm:$0xff]  ;;  %v55_v41 = vld [vmem:[%s4879_s0 + $0x28] sm:$0xff]  ;;  %v54_v42 = vld [vmem:[%s4879_s0 + $0x20] sm:$0xff] }
   0xb   :  { %v57_v43 = vld [vmem:[%s4879_s0 + $0x38] sm:$0xff]  ;;  %v56_v44 = vld [vmem:[%s4879_s0 + $0x30] sm:$0xff]  ;;  %v59_v45 = vld [vmem:[%s4879_s0 + $0x48] sm:$0xff] }
   0xc   :  { %2994 = vmatpush1.bf16.msra.mxu0 %v2993_v9  ;;  %v58_v46 = vld [vmem:[%s4879_s0 + $0x40] sm:$0xff]  ;;  %v61_v47 = vld [vmem:[%s4879_s0 + $0x58] sm:$0xff]  ;;  %v60_v48 = vld [vmem:[%s4879_s0 + $0x50] sm:$0xff] }
   0xd   :  { %2995 = vmatprep.subr.bf16.mxu0 %v3559_v0  ;;  %v63_v49 = vld [vmem:[%s4879_s0 + $0x68] sm:$0xff]  ;;  %v62_v50 = vld [vmem:[%s4879_s0 + $0x60] sm:$0xff]  ;;  %v65_v51 = vld [vmem:[%s4879_s0 + $0x78] sm:$0xff] }
   0xe   :  { %v64_v52 = vld [vmem:[%s4879_s0 + $0x70] sm:$0xff]  ;;  %v371_v24 = vld [vmem:[%s4880_s5] sm:$0xff] }
   0xf   :  { %v373_v27 = vld [vmem:[%s4880_s5 + $0x10] sm:$0xff]  ;;  %v375_v30 = vld [vmem:[%s4880_s5 + $0x20] sm:$0xff] }
  0x10   :  { %2997 = vmatpush1.bf16.msra.mxu0 %v2996_v13  ;;  %v377_v33 = vld [vmem:[%s4880_s5 + $0x30] sm:$0xff] }
  0x11   :  { %2998 = vmatprep.subr.bf16.mxu0 %v3559_v0 }
  0x14   :  { %3000 = vmatpush1.bf16.msra.mxu0 %v2999_v16 }
  0x15   :  { %3001 = vmatprep.subr.bf16.mxu0 %v3559_v0 }
  0x18   :  { %3003 = vmatpush1.bf16.msra.mxu0 %v3002_v19 }
  0x19   :  { %3004 = vmatprep.subr.bf16.mxu0 %v3559_v0 }
  0x1c   :  { %3006 = vmatpush1.bf16.msra.mxu0 %v3005_v22 }
  0x1d   :  { %3007 = vmatprep.subr.bf16.mxu0 %v3559_v0 }
  0x20   :  { %3009 = vmatpush1.bf16.msra.mxu0 %v3008_v25  ;;  %v372_v25 = vld [vmem:[%s4880_s5 + $0x8] sm:$0xff] }
  0x21   :  { %3010 = vmatprep.subr.bf16.mxu0 %v3559_v0  ;;  %v3844_v26 = vpack.c.bf16 %v372_v25, %v371_v24 }
  0x24   :  { %3012 = vmatpush1.bf16.msra.mxu0 %v3011_v28  ;;  %v374_v28 = vld [vmem:[%s4880_s5 + $0x18] sm:$0xff] }
  0x25   :  { %3013 = vmatprep.subr.bf16.mxu0 %v3559_v0  ;;  %v3856_v29 = vpack.c.bf16 %v374_v28, %v373_v27 }
  0x28   :  { %3015 = vmatpush1.bf16.msra.mxu0 %v3014_v31  ;;  %v376_v31 = vld [vmem:[%s4880_s5 + $0x28] sm:$0xff] }
  0x29   :  { %3016 = vmatprep.subr.bf16.mxu0 %v3559_v0  ;;  %v3868_v32 = vpack.c.bf16 %v376_v31, %v375_v30 }
  0x2c   :  { %3018 = vmatpush1.bf16.msra.mxu0 %v3017_v34  ;;  %v378_v34 = vld [vmem:[%s4880_s5 + $0x38] sm:$0xff] }
  0x2d   :  { %3019 = vmatprep.subr.bf16.mxu0 %v3559_v0  ;;  %v3878_v35 = vpack.c.bf16 %v378_v34, %v377_v33 }
  0x30   :  { %3021 = vmatpush1.bf16.msra.mxu0 %v3020_v37 }
  0x33   :  { %180 = vmatmul.mubr.f32.vlgmr.msra.gmra.mrb[0].mxu0 %v50_v38 }
  0x34   :  { %2549 = vmatprep.mubr.msk.f32.mxu0 %vm90_vm0, %v53_v39 }
  0x37   :  { %185 = vmatmul.mubr.f32.gmra.mrb[2].mxu0 %v52_v40  ;;  %v2560_v40 = vld [vmem:[%s4881_s2 + $0x40] sm:$0xff] }
  0x38   :  { %2550 = vmatprep.mubr.msk.f32.mxu0 %vm90_vm0, %v55_v41  ;;  %v2561_v41 = vld [vmem:[%s4881_s2 + $0x48] sm:$0xff] }
  0x3b   :  { %190 = vmatmul.mubr.f32.gmra.mrb[4].mxu0 %v54_v42  ;;  %v3070_v42 = vpack.c.bf16 %v2561_v41, %v2560_v40  ;;  %v606_v40 = vld [vmem:[%s4881_s2 + $0x28] sm:$0xff] }
  0x3c   :  { %2551 = vmatprep.mubr.msk.f32.mxu0 %vm90_vm0, %v57_v43  ;;  %v2562_v43 = vld [vmem:[%s4881_s2 + $0x50] sm:$0xff] }
  0x3d   :  { %3071 = vmatprep.subr.bf16.mxu0 %v3070_v42 }
  0x3e   :  { %3073 = vmatpush3.bf16.msra.mxu0 %v3070_v42 }
  0x3f   :  { %195 = vmatmul.mubr.f32.gmra.mrb[6].mxu0 %v56_v44  ;;  %v2563_v44 = vld [vmem:[%s4881_s2 + $0x58] sm:$0xff] }
  0x40   :  { %2552 = vmatprep.mubr.msk.f32.mxu0 %vm90_vm0, %v59_v45  ;;  %v3074_v45 = vpack.c.bf16 %v2563_v44, %v2562_v43 }
  0x42   :  { %3075 = vmatprep.subr.bf16.mxu0 %v3074_v45 }
  0x43   :  { %200 = vmatmul.mubr.f32.gmra.mrb[8].mxu0 %v58_v46  ;;  %v2564_v46 = vld [vmem:[%s4881_s2 + $0x60] sm:$0xff] }
  0x44   :  { %2553 = vmatprep.mubr.msk.f32.mxu0 %vm90_vm0, %v61_v47  ;;  %3077 = vmatpush3.bf16.msra.mxu0 %v3074_v45  ;;  %v2565_v47 = vld [vmem:[%s4881_s2 + $0x68] sm:$0xff] }
  0x47   :  { %205 = vmatmul.mubr.f32.gmra.mrb[10].mxu0 %v60_v48  ;;  %v3078_v48 = vpack.c.bf16 %v2565_v47, %v2564_v46 }
  0x48   :  { %2554 = vmatprep.mubr.msk.f32.mxu0 %vm90_vm0, %v63_v49  ;;  %v2566_v49 = vld [vmem:[%s4881_s2 + $0x70] sm:$0xff] }
  0x49   :  { %3079 = vmatprep.subr.bf16.mxu0 %v3078_v48 }
  0x4a   :  { %3081 = vmatpush3.bf16.msra.mxu0 %v3078_v48 }
  0x4b   :  { %210 = vmatmul.mubr.f32.gmra.mrb[12].mxu0 %v62_v50  ;;  %v2567_v50 = vld [vmem:[%s4881_s2 + $0x78] sm:$0xff] }
  0x4c   :  { %2555 = vmatprep.mubr.msk.f32.mxu0 %vm90_vm0, %v65_v51  ;;  %v3082_v51 = vpack.c.bf16 %v2567_v50, %v2566_v49 }
  0x4e   :  { %3083 = vmatprep.subr.bf16.mxu0 %v3082_v51 }
  0x4f   :  { %215 = vmatmul.mubr.f32.gmra.mrb[14].mxu0 %v64_v52  ;;  %v601_v52 = vld [vmem:[%s4881_s2] sm:$0xff] }
  0x50   :  { %3085 = vmatpush3.bf16.msra.mxu0 %v3082_v51 }
 0x106   :  { %v3787_v54 = vpop.f32.mrb[0].mxu0 }
 0x107   :  { %v183_v55 = vpop.f32.mrb[1].mxu0  ;;  %v293_v57 = vmul.f32 %v3787_v54, %v3787_v54 }
 0x108   :  { %v602_v55 = vld [vmem:[%s4881_s2 + $0x8] sm:$0xff] }
 0x10a   :  { %v3789_v56 = vpop.f32.mrb[2].mxu0 }
 0x10b   :  { %v294_v58 = vmul.f32 %v3789_v56, %v3789_v56  ;;  %v188_v59 = vpop.f32.mrb[3].mxu0  ;;  %v3023_v60 = vpack.c.bf16 %v3789_v56, %v3787_v54 }
 0x10d   :  { %v3035_v61 = vpack.c.bf16 %v294_v58, %v293_v57  ;;  %3024 = vmatpush3.bf16.msra.mxu1 %v3023_v60  ;;  %v3086_v57 = vpack.c.bf16 %v602_v55, %v601_v52 }
 0x10e   :  { %v3797_v62 = vpop.f32.mrb[4].mxu0  ;;  %3025 = vmatprep.subr.bf16.mxu1 %v3559_v0 }
 0x10f   :  { %v193_v63 = vpop.f32.mrb[5].mxu0  ;;  %v295_v2 = vmul.f32 %v3797_v62, %v3797_v62  ;;  %3087 = vmatprep.subr.bf16.mxu0 %v3086_v57 }
 0x112   :  { %v3800_v1 = vpop.f32.mrb[6].mxu0 }
 0x113   :  { %v3026_v3 = vpack.c.bf16 %v3800_v1, %v3797_v62  ;;  %v296_v4 = vmul.f32 %v3800_v1, %v3800_v1  ;;  %v198_v5 = vpop.f32.mrb[7].mxu0 }
 0x115   :  { %v3038_v6 = vpack.c.bf16 %v296_v4, %v295_v2  ;;  %3027 = vmatpush3.bf16.msra.mxu1 %v3026_v3 }
 0x116   :  { %v3808_v7 = vpop.f32.mrb[8].mxu0  ;;  %3028 = vmatprep.subr.bf16.mxu1 %v3559_v0 }
 0x117   :  { %v203_v8 = vpop.f32.mrb[9].mxu0  ;;  %v297_v10 = vmul.f32 %v3808_v7, %v3808_v7 }
 0x11a   :  { %v3811_v9 = vpop.f32.mrb[10].mxu0 }
 0x11b   :  { %v3029_v11 = vpack.c.bf16 %v3811_v9, %v3808_v7  ;;  %v298_v12 = vmul.f32 %v3811_v9, %v3811_v9  ;;  %v208_v13 = vpop.f32.mrb[11].mxu0 }
 0x11d   :  { %v3041_v14 = vpack.c.bf16 %v298_v12, %v297_v10  ;;  %3030 = vmatpush3.bf16.msra.mxu1 %v3029_v11  ;;  %v529_v10 = vld [vmem:[%s4882_s7] sm:$0x1] }
 0x11e   :  { %v3819_v15 = vpop.f32.mrb[12].mxu0  ;;  %3031 = vmatprep.subr.bf16.mxu1 %v3559_v0 }
 0x11f   :  { %v213_v16 = vpop.f32.mrb[13].mxu0  ;;  %v299_v18 = vmul.f32 %v3819_v15, %v3819_v15 }
 0x122   :  { %v3822_v17 = vpop.f32.mrb[14].mxu0 }
 0x123   :  { %v3032_v19 = vpack.c.bf16 %v3822_v17, %v3819_v15  ;;  %v300_v20 = vmul.f32 %v3822_v17, %v3822_v17  ;;  %v218_v21 = vpop.f32.mrb[15].mxu0 }
 0x125   :  { %v3044_v22 = vpack.c.bf16 %v300_v20, %v299_v18  ;;  %3033 = vmatpush3.bf16.msra.mxu1 %v3032_v19 }
 0x126   :  { %3034 = vmatprep.subr.bf16.mxu1 %v3559_v0 }
 0x128   :  { %2761 = vmatmul.mubr.msk.f32.vlgmr.msra.gmra.mrb[0].mxu1 %vm90_vm0, %v3562_v23 }
 0x129   :  { %3036 = vmatpush3.bf16.msra.mxu1 %v3035_v61  ;;  %2779 = vmatprep.mubr.msk.f32.mxu1 %vm3560_vm1, %v3561_v53 }
 0x12a   :  { %3037 = vmatprep.subr.bf16.mxu1 %v3559_v0 }
 0x12d   :  { %3039 = vmatpush3.bf16.msra.mxu1 %v3038_v6  ;;  %v537_v6 = vlaneseq }
 0x12e   :  { %3040 = vmatprep.subr.bf16.mxu1 %v3559_v0 }
 0x12f   :  { %v3927_v8 = vshrl.u32 %v537_v6, 7 }
 0x131   :  { %3042 = vmatpush3.bf16.msra.mxu1 %v3041_v14  ;;  %v3933_v11 = vsub.s32 0, %v3927_v8  ;;  %v533_v14 = vld [vmem:[%s4883_s8] sm:$0x1] }
 0x132   :  { %3043 = vmatprep.subr.bf16.mxu1 %v3559_v0 }
 0x135   :  { %3045 = vmatpush3.bf16.msra.mxu1 %v3044_v22 }
 0x136   :  { %3046 = vmatprep.subr.bf16.mxu1 %v3559_v0 }
 0x138   :  { %2780 = vmatmul.mubr.msk.f32.vlgmr.msra.gmra.mrb[2].mxu1 %vm90_vm0, %v3562_v23 }
 0x139   :  { %3048 = vmatpush3.bf16.msra.mxu1 %v3844_v26  ;;  %2798 = vmatprep.mubr.msk.f32.mxu1 %vm3560_vm1, %v3561_v53 }
 0x13a   :  { %3049 = vmatprep.subr.bf16.mxu1 %v3559_v0 }
 0x13d   :  { %3051 = vmatpush3.bf16.msra.mxu1 %v3856_v29 }
 0x13e   :  { %3052 = vmatprep.subr.bf16.mxu1 %v3559_v0 }
 0x141   :  { %3054 = vmatpush3.bf16.msra.mxu1 %v3868_v32 }
 0x142   :  { %3055 = vmatprep.subr.bf16.mxu1 %v3559_v0 }
 0x145   :  { %3057 = vmatpush3.bf16.msra.mxu1 %v3878_v35 }
 0x146   :  { %3058 = vmatprep.subr.bf16.mxu1 %v3559_v0 }
 0x1fb   :  { %v289_v36 = vpop.f32.mrb[0].mxu1 }
 0x1fc   :  { %v2762_v37 = vpop.f32.mrb[1].mxu1  ;;  %2799 = vmatmul.mubr.msk.f32.vlgmr.msra.gmra.mrb[4].mxu1 %vm90_vm0, %v289_v36 }
 0x1fd   :  { %3060 = vmatpush3.bf16.msra.mxu1 %v3844_v26  ;;  %2817 = vmatprep.mubr.msk.f32.mxu1 %vm3560_vm1, %v3561_v53 }
 0x1fe   :  { %3061 = vmatprep.subr.bf16.mxu1 %v3559_v0 }
 0x201   :  { %3063 = vmatpush3.bf16.msra.mxu1 %v3856_v29 }
 0x202   :  { %3064 = vmatprep.subr.bf16.mxu1 %v3559_v0 }
 0x205   :  { %3066 = vmatpush3.bf16.msra.mxu1 %v3868_v32 }
 0x206   :  { %3067 = vmatprep.subr.bf16.mxu1 %v3559_v0 }
 0x209   :  { %3069 = vmatpush3.bf16.msra.mxu1 %v3878_v35 }
 0x20a   :  { %3169 = vmatprep.subr.bf16.mxu1 %v3559_v0 }
 0x20b   :  { %v367_v38 = vpop.f32.mrb[2].mxu1 }
 0x20c   :  { %v2781_v39 = vpop.f32.mrb[3].mxu1  ;;  %2818 = vmatmul.mubr.msk.f32.vlgmr.msra.gmra.mrb[6].mxu1 %vm90_vm0, %v367_v38 }
 0x20d   :  { %2945 = vmatprep.mubr.msk.f32.mxu1 %vm3560_vm1, %v3561_v53  ;;  %v605_v39 = vld [vmem:[%s4881_s2 + $0x20] sm:$0xff] }
 0x20e   :  { %v3094_v51 = vpack.c.bf16 %v606_v40, %v605_v39  ;;  %v2597_v39 = vld [vmem:[%s4881_s2 + $0x128] sm:$0xff] }
 0x2cf   :  { %v448_v58 = vpop.f32.mrb[4].mxu1 }
 0x2d0   :  { %v2800_v59 = vpop.f32.mrb[5].mxu1  ;;  %v452_v60 = vmul.f32 0.001953125, %v448_v58 }
 0x2d2   :  { %v527_v63 = vmul.f32 %v452_v60, %v452_v60 }
 0x2df   :  { %v522_v61 = vpop.f32.mrb[6].mxu1 }
 0x2e0   :  { %v526_v2 = vmul.f32 0.001953125, %v522_v61  ;;  %v2819_v3 = vpop.f32.mrb[7].mxu1 }
 0x2e2   :  { %v528_v4 = vsub.f32 %v526_v2, %v527_v63  ;;  %v2572_v63 = vld [vmem:[%s4881_s2 + $0x80] sm:$0xff]  ;;  %v2573_v2 = vld [vmem:[%s4881_s2 + $0x88] sm:$0xff] }
 0x2e3   :  { %v3102_v3 = vpack.c.bf16 %v2573_v2, %v2572_v63 }
 0x2e4   :  { %v530_v5 = vadd.f32 1e-05, %v528_v4  ;;  %v2574_v4 = vld [vmem:[%s4881_s2 + $0x90] sm:$0xff] }
 0x2e6   :  { %3547 = vrsqrt.f32 %v530_v5  ;;  %v2575_v5 = vld [vmem:[%s4881_s2 + $0x98] sm:$0xff] }
 0x2f0   :  { %v3548_v12 = vpop.eup %3547 }
 0x2f1   :  { %v532_v13 = vmul.f32 %v3548_v12, %v529_v10  ;;  %v3106_v10 = vpack.c.bf16 %v2575_v5, %v2574_v4  ;;  %v2576_v12 = vld [vmem:[%s4881_s2 + $0xa0] sm:$0xff] }
 0x2f3   :  { %v534_v16 = vmul.f32 %v532_v13, %v452_v60  ;;  %v540_v18 = vrot.slane %v532_v13, %v3933_v11  ;;  %v607_v60 = vld [vmem:[%s4881_s2 + $0x30] sm:$0xff]  ;;  %v2577_v13 = vld [vmem:[%s4881_s2 + $0xa8] sm:$0xff] }
 0x2f5   :  { %v535_v19 = vsub.f32 %v533_v14, %v534_v16  ;;  %v544_v20 = vmul.f32 %v540_v18, %v3797_v62  ;;  %v545_v21 = vmul.f32 %v540_v18, %v3800_v1  ;;  %v542_v22 = vmul.f32 %v540_v18, %v3787_v54  ;;  %v603_v62 = vld [vmem:[%s4881_s2 + $0x10] sm:$0xff]  ;;  %v604_v54 = vld [vmem:[%s4881_s2 + $0x18] sm:$0xff] }
 0x2f6   :  { %v543_v24 = vmul.f32 %v540_v18, %v3789_v56  ;;  %v546_v25 = vmul.f32 %v540_v18, %v3808_v7  ;;  %v547_v27 = vmul.f32 %v540_v18, %v3811_v9  ;;  %v548_v28 = vmul.f32 %v540_v18, %v3819_v15  ;;  %v2578_v16 = vld [vmem:[%s4881_s2 + $0xb0] sm:$0xff] }
 0x2f7   :  { %v554_v30 = vrot.slane %v535_v19, %v3933_v11  ;;  %v549_v31 = vmul.f32 %v540_v18, %v3822_v17  ;;  %v3090_v38 = vpack.c.bf16 %v604_v54, %v603_v62  ;;  %v3110_v14 = vpack.c.bf16 %v2577_v13, %v2576_v12  ;;  %v2579_v18 = vld [vmem:[%s4881_s2 + $0xb8] sm:$0xff]  ;;  %v2588_v62 = vld [vmem:[%s4881_s2 + $0xf0] sm:$0xff] }
 0x2f8   :  { %v3114_v19 = vpack.c.bf16 %v2579_v18, %v2578_v16  ;;  %v2589_v54 = vld [vmem:[%s4881_s2 + $0xf8] sm:$0xff] }
 0x2f9   :  { %v558_v1 = vadd.f32 %v554_v30, %v544_v20  ;;  %v559_v56 = vadd.f32 %v554_v30, %v545_v21  ;;  %v556_v33 = vadd.f32 %v554_v30, %v542_v22  ;;  %v557_v7 = vadd.f32 %v554_v30, %v543_v24  ;;  %v2582_v20 = vld [vmem:[%s4881_s2 + $0xc0] sm:$0xff]  ;;  %v2583_v21 = vld [vmem:[%s4881_s2 + $0xc8] sm:$0xff]  ;;  %v2584_v24 = vld [vmem:[%s4881_s2 + $0xd0] sm:$0xff] }
 0x2fa   :  { %v560_v34 = vadd.f32 %v554_v30, %v546_v25  ;;  %v3954_v9 = vadd.f32 %v554_v30, %v547_v27  ;;  %v3956_v15 = vadd.f32 %v554_v30, %v548_v28  ;;  %v3958_v36 = vadd.f32 %v554_v30, %v549_v31  ;;  %v2585_v25 = vld [vmem:[%s4881_s2 + $0xd8] sm:$0xff]  ;;  %v2586_v28 = vld [vmem:[%s4881_s2 + $0xe0] sm:$0xff]  ;;  %v2587_v30 = vld [vmem:[%s4881_s2 + $0xe8] sm:$0xff] }
 0x2fb   :  { %v566_v17 = vmax.f32 %v558_v1, 0.0  ;;  %v567_v37 = vmax.f32 %v559_v56, 0.0  ;;  %v564_v45 = vmax.f32 %v556_v33, 0.0  ;;  %v565_v6 = vmax.f32 %v557_v7, 0.0  ;;  %v2592_v56 = vld [vmem:[%s4881_s2 + $0x100] sm:$0xff]  ;;  %v2593_v33 = vld [vmem:[%s4881_s2 + $0x108] sm:$0xff] }
 0x2fc   :  { %v568_v41 = vmax.f32 %v560_v34, 0.0  ;;  %v569_v42 = vmax.f32 %v3954_v9, 0.0  ;;  %v570_v43 = vmax.f32 %v3956_v15, 0.0  ;;  %v571_v44 = vmax.f32 %v3958_v36, 0.0  ;;  %v2594_v9 = vld [vmem:[%s4881_s2 + $0x110] sm:$0xff]  ;;  %v2595_v15 = vld [vmem:[%s4881_s2 + $0x118] sm:$0xff] }
 0x2fd   :  { %2836 = vmatprep.mubr.msk.f32.mxu0 %vm90_vm0, %v566_v17  ;;  %v965_v46 = vrot.slane %v567_v37, 7  ;;  %v3118_v22 = vpack.c.bf16 %v2583_v21, %v2582_v20  ;;  %v3122_v27 = vpack.c.bf16 %v2585_v25, %v2584_v24  ;;  %v3126_v31 = vpack.c.bf16 %v2587_v30, %v2586_v28  ;;  %v1491_v21 = vld [vmem:[%s4884_s3 + $0x28] sm:$0xff]  ;;  %v1490_v25 = vld [vmem:[%s4884_s3 + $0x20] sm:$0xff] }
 0x2fe   :  { %2837 = vmatmul.mubr.msk.f32.vlgmr.msra.gmra.mrb[16].mxu0 %vm90_vm0, %v567_v37  ;;  %v966_v47 = vrot.slane %v568_v41, 7  ;;  %v968_v48 = vrot.slane %v569_v42, 7  ;;  %v1066_v49 = vrot.slane %v570_v43, 7  ;;  %v1068_v50 = vrot.slane %v571_v44, 7  ;;  %v1495_v30 = vld [vmem:[%s4884_s3 + $0x48] sm:$0xff] }
 0x2ff   :  { %3089 = vmatpush3.bf16.msra.mxu0 %v3086_v57  ;;  %2855 = vmatprep.mubr.msk.f32.mxu0 %vm90_vm0, %v564_v45  ;;  %v608_v57 = vld [vmem:[%s4881_s2 + $0x38] sm:$0xff]  ;;  %v3130_v1 = vpack.c.bf16 %v2589_v54, %v2588_v62  ;;  %v579_v7 = vand.u32 7, %v3927_v8  ;;  %v3134_v34 = vpack.c.bf16 %v2593_v33, %v2592_v56  ;;  %v3138_v37 = vpack.c.bf16 %v2595_v15, %v2594_v9  ;;  %v2602_v45 = vld [vmem:[%s4881_s2 + $0x140] sm:$0xff]  ;;  %v1499_v56 = vld [vmem:[%s4884_s3 + $0x68] sm:$0xff] }
 0x300   :  { %3091 = vmatprep.subr.bf16.mxu0 %v3090_v38  ;;  %v3974_v52 = vsel %vm964_vm2, %v965_v46, %v966_v47  ;;  %v3976_v55 = vsel %vm964_vm2, %v966_v47, %v968_v48  ;;  %v3978_v58 = vsel %vm964_vm2, %v968_v48, %v1066_v49  ;;  %v3980_v59 = vsel %vm964_vm2, %v1066_v49, %v1068_v50  ;;  %v2603_v46 = vld [vmem:[%s4881_s2 + $0x148] sm:$0xff]  ;;  %v2604_v49 = vld [vmem:[%s4881_s2 + $0x150] sm:$0xff]  ;;  %v2605_v50 = vld [vmem:[%s4881_s2 + $0x158] sm:$0xff] }
 0x301   :  { %v3098_v61 = vpack.c.bf16 %v608_v57, %v607_v60  ;;  %vm4053_vm3 = vcmp.eq.s32.totalorder %v579_v7, 0  ;;  %v574_v36 = vadd.s32 8, %v3927_v8  ;;  %v3150_v48 = vpack.c.bf16 %v2603_v46, %v2602_v45  ;;  %v2606_v57 = vld [vmem:[%s4881_s2 + $0x160] sm:$0xff]  ;;  %v1501_v7 = vld [vmem:[%s4884_s3 + $0x78] sm:$0xff]  ;;  %v1500_v9 = vld [vmem:[%s4884_s3 + $0x70] sm:$0xff] }
 0x302   :  { %v972_v40 = vsel %vm4053_vm3, 0.0, %v3974_v52  ;;  %v3154_v52 = vpack.c.bf16 %v2605_v50, %v2604_v49  ;;  %v1072_v63 = vsel %vm4053_vm3, 0.0, %v3978_v58  ;;  %v1494_v54 = vld [vmem:[%s4884_s3 + $0x40] sm:$0xff]  ;;  %v3208_v15 = vpack.c.bf16 %v1501_v7, %v1499_v56  ;;  %v1754_v56 = vld [vmem:[%s4887_s6 + $0xb8] sm:$0xff] }
 0x303   :  { %3093 = vmatpush3.bf16.msra.mxu0 %v3090_v38  ;;  %v2596_v38 = vld [vmem:[%s4881_s2 + $0x120] sm:$0xff]  ;;  %v586_v47 = vand.u32 7, %v574_v36 }
 0x304   :  { %3095 = vmatprep.subr.bf16.mxu0 %v3094_v51  ;;  %v1461_v45 = vld [vmem:[%s4885_s9] sm:$0x1] }
 0x305   :  { %vm4089_vm4 = vcmp.eq.s32.totalorder %v586_v47, 0 }
 0x306   :  { %v973_v60 = vsel %vm4089_vm4, 0.0, %v3976_v55  ;;  %v2608_v55 = vld [vmem:[%s4881_s2 + $0x170] sm:$0xff]  ;;  %v1073_v58 = vsel %vm4089_vm4, 0.0, %v3980_v59 }
 0x307   :  { %3097 = vmatpush3.bf16.msra.mxu0 %v3094_v51 }
 0x308   :  { %3099 = vmatprep.subr.bf16.mxu0 %v3098_v61 }
 0x30b   :  { %3101 = vmatpush3.bf16.msra.mxu0 %v3098_v61  ;;  %v2607_v61 = vld [vmem:[%s4881_s2 + $0x168] sm:$0xff] }
 0x30c   :  { %3103 = vmatprep.subr.bf16.mxu0 %v3102_v3  ;;  %v3158_v2 = vpack.c.bf16 %v2607_v61, %v2606_v57 }
 0x30e   :  { %2856 = vmatmul.mubr.msk.f32.vlgmr.msra.gmra.mrb[16].mxu0 %vm90_vm0, %v565_v6 }
 0x30f   :  { %3105 = vmatpush3.bf16.msra.mxu0 %v3102_v3  ;;  %2874 = vmatprep.mubr.msk.f32.mxu0 %vm90_vm0, %v568_v41  ;;  %v3142_v41 = vpack.c.bf16 %v2597_v39, %v2596_v38  ;;  %v2609_v3 = vld [vmem:[%s4881_s2 + $0x178] sm:$0xff] }
 0x310   :  { %3107 = vmatprep.subr.bf16.mxu0 %v3106_v10  ;;  %v3162_v4 = vpack.c.bf16 %v2609_v3, %v2608_v55  ;;  %v1732_v3 = vld [vmem:[%s4887_s6 + $0x8] sm:$0xff] }
 0x313   :  { %3109 = vmatpush3.bf16.msra.mxu0 %v3106_v10 }
 0x314   :  { %3111 = vmatprep.subr.bf16.mxu0 %v3110_v14 }
 0x317   :  { %3113 = vmatpush3.bf16.msra.mxu0 %v3110_v14 }
 0x318   :  { %3115 = vmatprep.subr.bf16.mxu0 %v3114_v19 }
 0x31b   :  { %3117 = vmatpush3.bf16.msra.mxu0 %v3114_v19 }
 0x31c   :  { %3119 = vmatprep.subr.bf16.mxu0 %v3118_v22 }
 0x31e   :  { %2875 = vmatmul.mubr.msk.f32.vlgmr.msra.gmra.mrb[16].mxu0 %vm90_vm0, %v569_v42  ;;  %v2598_v42 = vld [vmem:[%s4881_s2 + $0x130] sm:$0xff] }
 0x31f   :  { %3121 = vmatpush3.bf16.msra.mxu0 %v3118_v22  ;;  %2893 = vmatprep.mubr.msk.f32.mxu0 %vm90_vm0, %v570_v43  ;;  %v2599_v43 = vld [vmem:[%s4881_s2 + $0x138] sm:$0xff] }
 0x320   :  { %3123 = vmatprep.subr.bf16.mxu0 %v3122_v27  ;;  %v1493_v22 = vld [vmem:[%s4884_s3 + $0x38] sm:$0xff] }
 0x321   :  { %v3200_v24 = vpack.c.bf16 %v1493_v22, %v1491_v21 }
 0x323   :  { %3125 = vmatpush3.bf16.msra.mxu0 %v3122_v27  ;;  %v1492_v27 = vld [vmem:[%s4884_s3 + $0x30] sm:$0xff] }
 0x324   :  { %3127 = vmatprep.subr.bf16.mxu0 %v3126_v31  ;;  %v3202_v28 = vpack.c.bf16 %v1492_v27, %v1490_v25  ;;  %v1745_v25 = vld [vmem:[%s4887_s6 + $0x70] sm:$0xff]  ;;  %v1748_v27 = vld [vmem:[%s4887_s6 + $0x88] sm:$0xff] }
 0x327   :  { %3129 = vmatpush3.bf16.msra.mxu0 %v3126_v31  ;;  %v1497_v31 = vld [vmem:[%s4884_s3 + $0x58] sm:$0xff] }
 0x328   :  { %3131 = vmatprep.subr.bf16.mxu0 %v3130_v1  ;;  %v3204_v62 = vpack.c.bf16 %v1497_v31, %v1495_v30 }
 0x32b   :  { %3133 = vmatpush3.bf16.msra.mxu0 %v3130_v1  ;;  %v1496_v1 = vld [vmem:[%s4884_s3 + $0x50] sm:$0xff] }
 0x32c   :  { %3135 = vmatprep.subr.bf16.mxu0 %v3134_v34  ;;  %v3206_v33 = vpack.c.bf16 %v1496_v1, %v1494_v54  ;;  %v1749_v54 = vld [vmem:[%s4887_s6 + $0x90] sm:$0xff]  ;;  %v1752_v1 = vld [vmem:[%s4887_s6 + $0xa8] sm:$0xff] }
 0x32d   :  { %v4314_v7 = vpack.c.bf16 %v1754_v56, %v1752_v1  ;;  %v1783_v56 = vld [vmem:[%s4887_s6 + $0x1a0] sm:$0xff] }
 0x32e   :  { %2894 = vmatmul.mubr.msk.f32.vlgmr.msra.gmra.mrb[16].mxu0 %vm90_vm0, %v571_v44  ;;  %v3146_v44 = vpack.c.bf16 %v2599_v43, %v2598_v42 }
 0x32f   :  { %3137 = vmatpush3.bf16.msra.mxu0 %v3134_v34  ;;  %2912 = vmatprep.mubr.msk.f32.mxu0 %vm90_vm0, %v972_v40  ;;  %v1498_v34 = vld [vmem:[%s4884_s3 + $0x60] sm:$0xff] }
 0x330   :  { %3139 = vmatprep.subr.bf16.mxu0 %v3138_v37  ;;  %v3210_v17 = vpack.c.bf16 %v1500_v9, %v1498_v34  ;;  %v1751_v34 = vld [vmem:[%s4887_s6 + $0xa0] sm:$0xff]  ;;  %v1753_v9 = vld [vmem:[%s4887_s6 + $0xb0] sm:$0xff] }
 0x333   :  { %3141 = vmatpush3.bf16.msra.mxu0 %v3138_v37 }
 0x334   :  { %3143 = vmatprep.subr.bf16.mxu0 %v3142_v41 }
 0x337   :  { %3145 = vmatpush3.bf16.msra.mxu0 %v3142_v41 }
 0x338   :  { %3147 = vmatprep.subr.bf16.mxu0 %v3146_v44 }
 0x33b   :  { %3149 = vmatpush3.bf16.msra.mxu0 %v3146_v44 }
 0x33c   :  { %3151 = vmatprep.subr.bf16.mxu0 %v3150_v48 }
 0x33e   :  { %2913 = vmatmul.mubr.msk.f32.vlgmr.msra.gmra.mrb[16].mxu0 %vm90_vm0, %v973_v60 }
 0x33f   :  { %3153 = vmatpush3.bf16.msra.mxu0 %v3150_v48  ;;  %2931 = vmatprep.mubr.msk.f32.mxu0 %vm90_vm0, %v1072_v63  ;;  %v1465_v48 = vld [vmem:[%s4886_s10] sm:$0x1] }
 0x340   :  { %3155 = vmatprep.subr.bf16.mxu0 %v3154_v52 }
 0x343   :  { %3157 = vmatpush3.bf16.msra.mxu0 %v3154_v52 }
 0x344   :  { %3159 = vmatprep.subr.bf16.mxu0 %v3158_v2 }
 0x347   :  { %3161 = vmatpush3.bf16.msra.mxu0 %v3158_v2 }
 0x348   :  { %3163 = vmatprep.subr.bf16.mxu0 %v3162_v4 }
 0x34b   :  { %3165 = vmatpush3.bf16.msra.mxu0 %v3162_v4  ;;  %v1734_v4 = vld [vmem:[%s4887_s6 + $0x18] sm:$0xff] }
 0x34c   :  { %3166 = vmatprep.subr.bf16.mxu0 %v3559_v0 }
 0x34e   :  { %2932 = vmatmul.mubr.msk.f32.vlgmr.msra.gmra.mrb[16].mxu0 %vm90_vm0, %v1073_v58  ;;  %v1731_v58 = vld [vmem:[%s4887_s6] sm:$0xff] }
 0x34f   :  { %2938 = vmatprep.mubr.msk.f32.mxu0 %vm3560_vm1, %v3561_v53 }
 0x421   :  { %v4120_v5 = vpop.f32.mrb[16].mxu0 }
 0x422   :  { %v1240_v6 = vmul.f32 %v4120_v5, %v4120_v5  ;;  %v4124_v10 = vpop.f32.mrb[17].mxu0 }
 0x423   :  { %v3167_v12 = vpack.c.bf16 %v4120_v5, %v4124_v10  ;;  %v1239_v13 = vmul.f32 %v4124_v10, %v4124_v10 }
 0x425   :  { %v3170_v14 = vpack.c.bf16 %v1240_v6, %v1239_v13  ;;  %3168 = vmatpush3.bf16.msra.mxu0 %v3167_v12  ;;  %v1733_v6 = vld [vmem:[%s4887_s6 + $0x10] sm:$0xff]  ;;  %v1738_v12 = vld [vmem:[%s4887_s6 + $0x38] sm:$0xff] }
 0x426   :  { %v4239_v13 = vpack.c.bf16 %v1733_v6, %v1731_v58  ;;  %v1771_v6 = vld [vmem:[%s4887_s6 + $0x140] sm:$0xff] }
 0x427   :  { %3171 = vmatpush3.bf16.msra.mxu1 %v3170_v14 }
 0x428   :  { %2939 = vmatmul.mubr.msk.f32.vlgmr.msra.gmra.mrb[18].mxu0 %vm1166_vm5, %v3562_v23  ;;  %3172 = vmatprep.subr.bf16.mxu1 %v3559_v0 }
 0x42a   :  { %2946 = vmatmul.mubr.msk.f32.vlgmr.msra.gmra.mrb[8].mxu1 %vm1166_vm5, %v3562_v23 }
 0x42b   :  { %3174 = vmatpush3.bf16.msra.mxu1 %v3844_v26  ;;  %2964 = vmatprep.mubr.msk.f32.mxu1 %vm3560_vm1, %v3561_v53 }
 0x42c   :  { %3175 = vmatprep.subr.bf16.mxu1 %v3559_v0 }
 0x42f   :  { %3177 = vmatpush3.bf16.msra.mxu1 %v3856_v29 }
 0x430   :  { %3178 = vmatprep.subr.bf16.mxu1 %v3559_v0 }
 0x433   :  { %3180 = vmatpush3.bf16.msra.mxu1 %v3868_v32 }
 0x434   :  { %3181 = vmatprep.subr.bf16.mxu1 %v3559_v0 }
 0x437   :  { %3183 = vmatpush3.bf16.msra.mxu1 %v3878_v35 }
 0x438   :  { %3184 = vmatprep.subr.bf16.mxu1 %v3559_v0 }
 0x4fb   :  { %v1235_v59 = vpop.f32.mrb[18].mxu0 }
 0x4fc   :  { %v2940_v16 = vpop.f32.mrb[19].mxu0  ;;  %2965 = vmatmul.mubr.msk.f32.vlgmr.msra.gmra.mrb[10].mxu1 %vm90_vm0, %v1235_v59  ;;  %v1735_v59 = vld [vmem:[%s4887_s6 + $0x20] sm:$0xff] }
 0x4fd   :  { %3186 = vmatpush3.bf16.msra.mxu1 %v3844_v26  ;;  %v1307_v18 = vpop.f32.mrb[8].mxu1  ;;  %2983 = vmatprep.mubr.msk.f32.mxu1 %vm3560_vm1, %v3561_v53  ;;  %v1487_v26 = vld [vmem:[%s4884_s3 + $0x8] sm:$0xff]  ;;  %v1737_v16 = vld [vmem:[%s4887_s6 + $0x30] sm:$0xff] }
 0x4fe   :  { %3187 = vmatprep.subr.bf16.mxu1 %v3559_v0  ;;  %v2947_v19 = vpop.f32.mrb[9].mxu1 }
 0x4ff   :  { %v1742_v19 = vld [vmem:[%s4887_s6 + $0x58] sm:$0xff] }
 0x501   :  { %3189 = vmatpush3.bf16.msra.mxu1 %v3856_v29  ;;  %v1489_v29 = vld [vmem:[%s4884_s3 + $0x18] sm:$0xff] }
 0x502   :  { %3190 = vmatprep.subr.bf16.mxu1 %v3559_v0  ;;  %v3196_v20 = vpack.c.bf16 %v1489_v29, %v1487_v26  ;;  %v4258_v26 = vpack.c.bf16 %v1737_v16, %v1735_v59  ;;  %v1778_v59 = vld [vmem:[%s4887_s6 + $0x178] sm:$0xff] }
 0x505   :  { %3192 = vmatpush3.bf16.msra.mxu1 %v3868_v32  ;;  %v1486_v32 = vld [vmem:[%s4884_s3] sm:$0xff] }
 0x506   :  { %3193 = vmatprep.subr.bf16.mxu1 %v3559_v0  ;;  %v1488_v0 = vld [vmem:[%s4884_s3 + $0x10] sm:$0xff] }
 0x509   :  { %3195 = vmatpush3.bf16.msra.mxu1 %v3878_v35  ;;  %v3198_v35 = vpack.c.bf16 %v1488_v0, %v1486_v32  ;;  %v1741_v32 = vld [vmem:[%s4887_s6 + $0x50] sm:$0xff]  ;;  %v1744_v0 = vld [vmem:[%s4887_s6 + $0x68] sm:$0xff] }
 0x50a   :  { %3197 = vmatprep.subr.bf16.mxu1 %v3196_v20  ;;  %v1739_v20 = vld [vmem:[%s4887_s6 + $0x40] sm:$0xff] }
 0x50b   :  { %v4276_v21 = vpack.c.bf16 %v1741_v32, %v1739_v20  ;;  %v1777_v20 = vld [vmem:[%s4887_s6 + $0x170] sm:$0xff]  ;;  %v1780_v32 = vld [vmem:[%s4887_s6 + $0x188] sm:$0xff] }
 0x50c   :  { %2984 = vmatmul.mubr.msk.f32.vlgmr.msra.gmra.mrb[12].mxu1 %vm90_vm0, %v1307_v18  ;;  %v1740_v18 = vld [vmem:[%s4887_s6 + $0x48] sm:$0xff] }
 0x50d   :  { %1572 = vmatprep.mubr.f32.mxu1 %v3561_v53  ;;  %3199 = vmatpush1.bf16.msra.mxu1 %v3198_v35  ;;  %v4260_v29 = vpack.c.bf16 %v1742_v19, %v1740_v18  ;;  %v1746_v35 = vld [vmem:[%s4887_s6 + $0x78] sm:$0xff]  ;;  %v1775_v19 = vld [vmem:[%s4887_s6 + $0x160] sm:$0xff] }
 0x50e   :  { %3201 = vmatprep.subr.bf16.mxu1 %v3200_v24  ;;  %v4278_v22 = vpack.c.bf16 %v1746_v35, %v1744_v0  ;;  %v1743_v24 = vld [vmem:[%s4887_s6 + $0x60] sm:$0xff]  ;;  %v1782_v0 = vld [vmem:[%s4887_s6 + $0x198] sm:$0xff]  ;;  %v4438_v35 = vpack.c.bf16 %v1777_v20, %v1775_v19 }
 0x50f   :  { %v4294_v30 = vpack.c.bf16 %v1745_v25, %v1743_v24  ;;  %v4440_v24 = vpack.c.bf16 %v1782_v0, %v1780_v32  ;;  %v1779_v25 = vld [vmem:[%s4887_s6 + $0x180] sm:$0xff]  ;;  %v2030_v32 = vld [vmem:[%s4888_s4 + $0x8] sm:$0xff]  ;;  %v2032_v0 = vld [vmem:[%s4888_s4 + $0x18] sm:$0xff] }
 0x511   :  { %3203 = vmatpush1.bf16.msra.mxu1 %v3202_v28  ;;  %v1750_v28 = vld [vmem:[%s4887_s6 + $0x98] sm:$0xff] }
 0x512   :  { %3205 = vmatprep.subr.bf16.mxu1 %v3204_v62  ;;  %v4296_v31 = vpack.c.bf16 %v1750_v28, %v1748_v27  ;;  %v1747_v62 = vld [vmem:[%s4887_s6 + $0x80] sm:$0xff]  ;;  %v1781_v27 = vld [vmem:[%s4887_s6 + $0x190] sm:$0xff]  ;;  %v1784_v28 = vld [vmem:[%s4887_s6 + $0x1a8] sm:$0xff] }
 0x515   :  { %3207 = vmatpush1.bf16.msra.mxu1 %v3206_v33  ;;  %v4312_v33 = vpack.c.bf16 %v1749_v54, %v1747_v62  ;;  %v1786_v62 = vld [vmem:[%s4887_s6 + $0x1b8] sm:$0xff]  ;;  %v4456_v54 = vpack.c.bf16 %v1781_v27, %v1779_v25  ;;  %v3348_v25 = vpack.c.bf16 %v2032_v0, %v2030_v32  ;;  %v2029_v27 = vld [vmem:[%s4888_s4] sm:$0xff] }
 0x516   :  { %3209 = vmatprep.subr.bf16.mxu1 %v3208_v15  ;;  %v1756_v15 = vld [vmem:[%s4887_s6 + $0xc8] sm:$0xff]  ;;  %v4458_v1 = vpack.c.bf16 %v1786_v62, %v1784_v28  ;;  %v2031_v28 = vld [vmem:[%s4888_s4 + $0x10] sm:$0xff] }
 0x517   :  { %v2034_v62 = vld [vmem:[%s4888_s4 + $0x28] sm:$0xff] }
 0x519   :  { %3211 = vmatpush1.bf16.msra.mxu1 %v3210_v17  ;;  %v1758_v17 = vld [vmem:[%s4887_s6 + $0xd8] sm:$0xff] }
 0x5cf   :  { %v1380_v37 = vpop.f32.mrb[10].mxu1 }
 0x5d0   :  { %v2966_v38 = vpop.f32.mrb[11].mxu1  ;;  %v1384_v39 = vmul.f32 0.0078125, %v1380_v37  ;;  %v4330_v37 = vpack.c.bf16 %v1753_v9, %v1751_v34  ;;  %v1785_v34 = vld [vmem:[%s4887_s6 + $0x1b0] sm:$0xff]  ;;  %v1788_v9 = vld [vmem:[%s4887_s6 + $0x1c8] sm:$0xff] }
 0x5d1   :  { %v4332_v38 = vpack.c.bf16 %v1758_v17, %v1756_v15  ;;  %v1790_v15 = vld [vmem:[%s4887_s6 + $0x1d8] sm:$0xff]  ;;  %v4474_v17 = vpack.c.bf16 %v1785_v34, %v1783_v56 }
 0x5d2   :  { %v1459_v41 = vmul.f32 %v1384_v39, %v1384_v39  ;;  %v2036_v56 = vld [vmem:[%s4888_s4 + $0x38] sm:$0xff] }
 0x5df   :  { %v1454_v40 = vpop.f32.mrb[12].mxu1 }
 0x5e0   :  { %v1458_v42 = vmul.f32 0.0078125, %v1454_v40  ;;  %v2985_v43 = vpop.f32.mrb[13].mxu1  ;;  %v1757_v40 = vld [vmem:[%s4887_s6 + $0xd0] sm:$0xff] }
 0x5e2   :  { %v1460_v36 = vsub.f32 %v1458_v42, %v1459_v41  ;;  %v1760_v41 = vld [vmem:[%s4887_s6 + $0xe8] sm:$0xff]  ;;  %v1762_v42 = vld [vmem:[%s4887_s6 + $0xf8] sm:$0xff] }
 0x5e4   :  { %v1462_v44 = vadd.f32 1e-05, %v1460_v36  ;;  %v4350_v36 = vpack.c.bf16 %v1762_v42, %v1760_v41  ;;  %v1789_v41 = vld [vmem:[%s4887_s6 + $0x1d0] sm:$0xff]  ;;  %v1792_v42 = vld [vmem:[%s4887_s6 + $0x1e8] sm:$0xff] }
 0x5e6   :  { %3549 = vrsqrt.f32 %v1462_v44  ;;  %v1759_v44 = vld [vmem:[%s4887_s6 + $0xe0] sm:$0xff] }
 0x5f0   :  { %v3550_v46 = vpop.eup %3549 }
 0x5f1   :  { %v1464_v47 = vmul.f32 %v3550_v46, %v1461_v45  ;;  %v1761_v45 = vld [vmem:[%s4887_s6 + $0xf0] sm:$0xff]  ;;  %v1764_v46 = vld [vmem:[%s4887_s6 + $0x108] sm:$0xff] }
 0x5f3   :  { %v1466_v49 = vmul.f32 %v1464_v47, %v1384_v39  ;;  %v1472_v50 = vrot.slane %v1464_v47, %v3933_v11  ;;  %v1755_v39 = vld [vmem:[%s4887_s6 + $0xc0] sm:$0xff]  ;;  %v1766_v47 = vld [vmem:[%s4887_s6 + $0x118] sm:$0xff] }
 0x5f4   :  { %v4348_v43 = vpack.c.bf16 %v1757_v40, %v1755_v39  ;;  %v4476_v39 = vpack.c.bf16 %v1790_v15, %v1788_v9  ;;  %v1787_v40 = vld [vmem:[%s4887_s6 + $0x1c0] sm:$0xff]  ;;  %v3350_v9 = vpack.c.bf16 %v2031_v28, %v2029_v27  ;;  %v2043_v27 = vld [vmem:[%s4888_s4 + $0x70] sm:$0xff]  ;;  %v2046_v28 = vld [vmem:[%s4888_s4 + $0x88] sm:$0xff] }
 0x5f5   :  { %v1467_v51 = vsub.f32 %v1465_v48, %v1466_v49  ;;  %v1474_v52 = vmul.f32 %v1472_v50, %v4124_v10  ;;  %v1475_v60 = vmul.f32 %v4120_v5, %v1472_v50  ;;  %v4228_v5 = vpack.c.bf16 %v1734_v4, %v1732_v3  ;;  %v1736_v10 = vld [vmem:[%s4887_s6 + $0x28] sm:$0xff]  ;;  %v1763_v50 = vld [vmem:[%s4887_s6 + $0x100] sm:$0xff]  ;;  %v1774_v3 = vld [vmem:[%s4887_s6 + $0x158] sm:$0xff] }
 0x5f6   :  { %v4241_v14 = vpack.c.bf16 %v1738_v12, %v1736_v10  ;;  %v4366_v48 = vpack.c.bf16 %v1761_v45, %v1759_v44  ;;  %v4368_v49 = vpack.c.bf16 %v1766_v47, %v1764_v46  ;;  %v1773_v10 = vld [vmem:[%s4887_s6 + $0x150] sm:$0xff]  ;;  %v1776_v12 = vld [vmem:[%s4887_s6 + $0x168] sm:$0xff]  ;;  %v1794_v44 = vld [vmem:[%s4887_s6 + $0x1f8] sm:$0xff]  ;;  %v4492_v45 = vpack.c.bf16 %v1789_v41, %v1787_v40 }
 0x5f7   :  { %v1480_v57 = vrot.slane %v1467_v51, %v3933_v11  ;;  %3285 = vmatprep.subr.bf16.mxu0 %v4228_v5  ;;  %v1765_v51 = vld [vmem:[%s4887_s6 + $0x110] sm:$0xff]  ;;  %v4420_v16 = vpack.c.bf16 %v1773_v10, %v1771_v6  ;;  %v4422_v18 = vpack.c.bf16 %v1778_v59, %v1776_v12  ;;  %v4494_v46 = vpack.c.bf16 %v1794_v44, %v1792_v42  ;;  %v1791_v47 = vld [vmem:[%s4887_s6 + $0x1e0] sm:$0xff]  ;;  %v2026_v44 = vld [vmem:[%s4879_s0 + $0x8] sm:$0xff] }
 0x5f8   :  { %3287 = vmatpush1.bf16.msra.mxu0 %v4239_v13  ;;  %v3352_v40 = vpack.c.bf16 %v2036_v56, %v2034_v62  ;;  %v2033_v41 = vld [vmem:[%s4888_s4 + $0x20] sm:$0xff]  ;;  %v2035_v42 = vld [vmem:[%s4888_s4 + $0x30] sm:$0xff]  ;;  %v2048_v62 = vld [vmem:[%s4888_s4 + $0x98] sm:$0xff] }
 0x5f9   :  { %v1482_v61 = vadd.f32 %v1480_v57, %v1474_v52  ;;  %v1483_v63 = vadd.f32 %v1480_v57, %v1475_v60  ;;  %3289 = vmatprep.subr.bf16.mxu0 %v4241_v14  ;;  %v1768_v52 = vld [vmem:[%s4887_s6 + $0x128] sm:$0xff]  ;;  %v1770_v60 = vld [vmem:[%s4887_s6 + $0x138] sm:$0xff]  ;;  %v4384_v57 = vpack.c.bf16 %v1765_v51, %v1763_v50  ;;  %v1793_v50 = vld [vmem:[%s4887_s6 + $0x1f0] sm:$0xff] }
 0x5fa   :  { %v4504_v51 = vpack.c.bf16 %v1793_v50, %v1791_v47  ;;  %v2038_v47 = vld [vmem:[%s4888_s4 + $0x48] sm:$0xff]  ;;  %v2040_v50 = vld [vmem:[%s4888_s4 + $0x58] sm:$0xff] }
 0x5fb   :  { %v1484_v2 = vmax.f32 %v1482_v61, 0.0  ;;  %v1485_v55 = vmax.f32 %v1483_v63, 0.0  ;;  %v4386_v61 = vpack.c.bf16 %v1770_v60, %v1768_v52  ;;  %v1767_v63 = vld [vmem:[%s4887_s6 + $0x120] sm:$0xff] }
 0x5fc   :  { %3291 = vmatpush1.bf16.msra.mxu0 %v4258_v26 }
 0x5fd   :  { %2616 = vmatmul.mubr.msk.f32.vlgmr.msra.gmra.mrb[14].mxu1 %vm90_vm0, %v1484_v2  ;;  %3293 = vmatprep.subr.bf16.mxu0 %v4260_v29  ;;  %v1769_v2 = vld [vmem:[%s4887_s6 + $0x130] sm:$0xff] }
 0x5fe   :  { %1578 = vmatprep.mubr.f32.mxu1 %v3561_v53  ;;  %v4402_v4 = vpack.c.bf16 %v1769_v2, %v1767_v63 }
 0x600   :  { %3295 = vmatpush1.bf16.msra.mxu0 %v4276_v21 }
 0x601   :  { %2617 = vmatmul.mubr.msk.f32.gmra.mrb[16].mxu1 %vm90_vm0, %v1485_v55  ;;  %3297 = vmatprep.subr.bf16.mxu0 %v4278_v22  ;;  %v1772_v55 = vld [vmem:[%s4887_s6 + $0x148] sm:$0xff] }
 0x602   :  { %1649 = vmatprep.mubr.f32.mxu1 %v3561_v53  ;;  %v4404_v58 = vpack.c.bf16 %v1774_v3, %v1772_v55 }
 0x604   :  { %3299 = vmatpush1.bf16.msra.mxu0 %v4294_v30 }
 0x605   :  { %3301 = vmatprep.subr.bf16.mxu0 %v4296_v31 }
 0x608   :  { %3303 = vmatpush1.bf16.msra.mxu0 %v4312_v33 }
 0x609   :  { %3305 = vmatprep.subr.bf16.mxu0 %v4314_v7 }
 0x60c   :  { %3307 = vmatpush1.bf16.msra.mxu0 %v4330_v37 }
 0x60d   :  { %3309 = vmatprep.subr.bf16.mxu0 %v4332_v38 }
 0x610   :  { %3311 = vmatpush1.bf16.msra.mxu0 %v4348_v43 }
 0x611   :  { %3313 = vmatprep.subr.bf16.mxu0 %v4350_v36 }
 0x614   :  { %3315 = vmatpush1.bf16.msra.mxu0 %v4366_v48 }
 0x615   :  { %3317 = vmatprep.subr.bf16.mxu0 %v4368_v49 }
 0x618   :  { %3319 = vmatpush1.bf16.msra.mxu0 %v4384_v57 }
 0x619   :  { %3321 = vmatprep.subr.bf16.mxu0 %v4386_v61 }
 0x61c   :  { %3323 = vmatpush1.bf16.msra.mxu0 %v4402_v4 }
 0x61d   :  { %3325 = vmatprep.subr.bf16.mxu0 %v4404_v58 }
 0x620   :  { %3327 = vmatpush1.bf16.msra.mxu0 %v4420_v16 }
 0x621   :  { %3329 = vmatprep.subr.bf16.mxu0 %v4422_v18 }
 0x624   :  { %3331 = vmatpush1.bf16.msra.mxu0 %v4438_v35 }
 0x625   :  { %3333 = vmatprep.subr.bf16.mxu0 %v4440_v24 }
 0x628   :  { %3335 = vmatpush1.bf16.msra.mxu0 %v4456_v54 }
 0x629   :  { %3337 = vmatprep.subr.bf16.mxu0 %v4458_v1 }
 0x62c   :  { %3339 = vmatpush1.bf16.msra.mxu0 %v4474_v17 }
 0x62d   :  { %3341 = vmatprep.subr.bf16.mxu0 %v4476_v39 }
 0x630   :  { %3343 = vmatpush1.bf16.msra.mxu0 %v4492_v45 }
 0x631   :  { %3345 = vmatprep.subr.bf16.mxu0 %v4494_v46 }
 0x634   :  { %3347 = vmatpush1.bf16.msra.mxu0 %v4504_v51 }
 0x6d0   :  { %v4507_v52 = vpop.f32.mrb[14].mxu1 }
 0x6d1   :  { %v4509_v60 = vpop.f32.mrb[15].mxu1  ;;  %v1656_v2 = vmul.f32 %v4507_v52, %v4507_v52 }
 0x6d2   :  { %v1657_v10 = vmul.f32 %v4509_v60, %v4509_v60 }
 0x6d4   :  { %v4511_v63 = vpop.f32.mrb[16].mxu1 }
 0x6d5   :  { %v3214_v55 = vpack.c.bf16 %v4511_v63, %v4507_v52  ;;  %v1658_v3 = vmul.f32 %v4511_v63, %v4511_v63  ;;  %v4519_v6 = vpop.f32.mrb[17].mxu1 }
 0x6d6   :  { %v3212_v12 = vpack.c.bf16 %v4519_v6, %v4509_v60  ;;  %v1659_v59 = vmul.f32 %v4519_v6, %v4519_v6 }
 0x6d7   :  { %v3218_v19 = vpack.c.bf16 %v1658_v3, %v1656_v2 }
 0x6d8   :  { %3213 = vmatprep.subr.bf16.mxu1 %v3212_v12  ;;  %v3216_v20 = vpack.c.bf16 %v1659_v59, %v1657_v10  ;;  %v3356_v10 = vpack.c.bf16 %v2040_v50, %v2038_v47  ;;  %v2037_v12 = vld [vmem:[%s4888_s4 + $0x40] sm:$0xff]  ;;  %v2039_v59 = vld [vmem:[%s4888_s4 + $0x50] sm:$0xff] }
 0x6d9   :  { %3215 = vmatpush1.bf16.msra.mxu1 %v3214_v55  ;;  %v3354_v55 = vpack.c.bf16 %v2035_v42, %v2033_v41  ;;  %v3358_v32 = vpack.c.bf16 %v2039_v59, %v2037_v12  ;;  %v2052_v41 = vld [vmem:[%s4888_s4 + $0xb8] sm:$0xff]  ;;  %v2049_v47 = vld [vmem:[%s4888_s4 + $0xa0] sm:$0xff]  ;;  %v2051_v50 = vld [vmem:[%s4888_s4 + $0xb0] sm:$0xff] }
 0x6da   :  { %3217 = vmatprep.subr.bf16.mxu1 %v3216_v20  ;;  %v2044_v20 = vld [vmem:[%s4888_s4 + $0x78] sm:$0xff]  ;;  %v2053_v12 = vld [vmem:[%s4888_s4 + $0xc0] sm:$0xff]  ;;  %v2055_v59 = vld [vmem:[%s4888_s4 + $0xd0] sm:$0xff] }
 0x6dc   :  { %2618 = vmatmul.mubr.msk.f32.vlgmr.msra.gmra.mrb[18].mxu1 %vm1166_vm5, %v3562_v23 }
 0x6dd   :  { %3219 = vmatpush1.bf16.msra.mxu1 %v3218_v19  ;;  %1724 = vmatprep.mubr.f32.mxu1 %v3561_v53  ;;  %v2042_v19 = vld [vmem:[%s4888_s4 + $0x68] sm:$0xff] }
 0x6de   :  { %3221 = vmatprep.subr.bf16.mxu1 %v4228_v5  ;;  %v3360_v0 = vpack.c.bf16 %v2044_v20, %v2042_v19  ;;  %v2058_v19 = vld [vmem:[%s4888_s4 + $0xe8] sm:$0xff]  ;;  %v2060_v20 = vld [vmem:[%s4888_s4 + $0xf8] sm:$0xff] }
 0x6e0   :  { %2619 = vmatmul.mubr.msk.f32.vlgmr.msra.gmra.mrb[20].mxu1 %vm1166_vm5, %v3562_v23 }
 0x6e1   :  { %3223 = vmatpush1.bf16.msra.mxu1 %v4239_v13 }
 0x6e2   :  { %3225 = vmatprep.subr.bf16.mxu1 %v4241_v14 }
 0x6e5   :  { %3227 = vmatpush1.bf16.msra.mxu1 %v4258_v26 }
 0x6e6   :  { %3229 = vmatprep.subr.bf16.mxu1 %v4260_v29 }
 0x6e9   :  { %3231 = vmatpush1.bf16.msra.mxu1 %v4276_v21 }
 0x6ea   :  { %3233 = vmatprep.subr.bf16.mxu1 %v4278_v22 }
 0x6ed   :  { %3235 = vmatpush1.bf16.msra.mxu1 %v4294_v30 }
 0x6ee   :  { %3237 = vmatprep.subr.bf16.mxu1 %v4296_v31 }
 0x6f1   :  { %3239 = vmatpush1.bf16.msra.mxu1 %v4312_v33 }
 0x6f2   :  { %3241 = vmatprep.subr.bf16.mxu1 %v4314_v7 }
 0x6f5   :  { %3243 = vmatpush1.bf16.msra.mxu1 %v4330_v37 }
 0x6f6   :  { %3245 = vmatprep.subr.bf16.mxu1 %v4332_v38 }
 0x6f9   :  { %3247 = vmatpush1.bf16.msra.mxu1 %v4348_v43 }
 0x6fa   :  { %3249 = vmatprep.subr.bf16.mxu1 %v4350_v36 }
 0x6fd   :  { %3251 = vmatpush1.bf16.msra.mxu1 %v4366_v48 }
 0x6fe   :  { %3253 = vmatprep.subr.bf16.mxu1 %v4368_v49 }
 0x701   :  { %3255 = vmatpush1.bf16.msra.mxu1 %v4384_v57 }
 0x702   :  { %3257 = vmatprep.subr.bf16.mxu1 %v4386_v61 }
 0x705   :  { %3259 = vmatpush1.bf16.msra.mxu1 %v4402_v4 }
 0x706   :  { %3261 = vmatprep.subr.bf16.mxu1 %v4404_v58 }
 0x709   :  { %3263 = vmatpush1.bf16.msra.mxu1 %v4420_v16 }
 0x70a   :  { %3265 = vmatprep.subr.bf16.mxu1 %v4422_v18 }
 0x70d   :  { %3267 = vmatpush1.bf16.msra.mxu1 %v4438_v35 }
 0x70e   :  { %3269 = vmatprep.subr.bf16.mxu1 %v4440_v24 }
 0x711   :  { %3271 = vmatpush1.bf16.msra.mxu1 %v4456_v54 }
 0x712   :  { %3273 = vmatprep.subr.bf16.mxu1 %v4458_v1 }
 0x715   :  { %3275 = vmatpush1.bf16.msra.mxu1 %v4474_v17 }
 0x716   :  { %3277 = vmatprep.subr.bf16.mxu1 %v4476_v39 }
 0x719   :  { %3279 = vmatpush1.bf16.msra.mxu1 %v4492_v45 }
 0x71a   :  { %3281 = vmatprep.subr.bf16.mxu1 %v4494_v46 }
 0x71d   :  { %3283 = vmatpush1.bf16.msra.mxu1 %v4504_v51 }
 0x71e   :  { %3349 = vmatprep.subr.bf16.mxu1 %v3348_v25  ;;  %v2041_v25 = vld [vmem:[%s4888_s4 + $0x60] sm:$0xff] }
 0x71f   :  { %v3362_v56 = vpack.c.bf16 %v2043_v27, %v2041_v25  ;;  %v2057_v25 = vld [vmem:[%s4888_s4 + $0xe0] sm:$0xff]  ;;  %v2059_v27 = vld [vmem:[%s4888_s4 + $0xf0] sm:$0xff] }
 0x7af   :  { %v1651_v34 = vpop.f32.mrb[18].mxu1 }
 0x7b0   :  { %v1653_v15 = vpop.f32.mrb[19].mxu1 }
 0x7b1   :  { %1859 = vmatprep.mubr.f32.mxu1 %v1653_v15  ;;  %v2047_v15 = vld [vmem:[%s4888_s4 + $0x90] sm:$0xff] }
 0x7b2   :  { %1860 = vmatmul.mubr.f32.vlgmr.msra.gmra.mrb[22].mxu1 %v1651_v34  ;;  %v3364_v34 = vpack.c.bf16 %v2048_v62, %v2046_v28  ;;  %v2062_v28 = vld [vmem:[%s4888_s4 + $0x108] sm:$0xff]  ;;  %v2064_v62 = vld [vmem:[%s4888_s4 + $0x118] sm:$0xff] }
 0x7b3   :  { %3351 = vmatpush1.bf16.msra.mxu1 %v3350_v9  ;;  %v1726_v2 = vpop.f32.mrb[20].mxu1  ;;  %2620 = vmatprep.mubr.msk.f32.mxu1 %vm90_vm0, %v2026_v44  ;;  %v2045_v9 = vld [vmem:[%s4888_s4 + $0x80] sm:$0xff] }
 0x7b4   :  { %v1728_v3 = vpop.f32.mrb[21].mxu1  ;;  %3353 = vmatprep.subr.bf16.mxu1 %v3352_v40  ;;  %v2050_v40 = vld [vmem:[%s4888_s4 + $0xa8] sm:$0xff]  ;;  %v3366_v42 = vpack.c.bf16 %v2047_v15, %v2045_v9  ;;  %v2061_v9 = vld [vmem:[%s4888_s4 + $0x100] sm:$0xff]  ;;  %v2063_v15 = vld [vmem:[%s4888_s4 + $0x110] sm:$0xff] }
 0x7b5   :  { %1932 = vmatprep.mubr.f32.mxu0 %v1728_v3  ;;  %v3368_v44 = vpack.c.bf16 %v2052_v41, %v2050_v40  ;;  %v3370_v3 = vpack.c.bf16 %v2051_v50, %v2049_v47  ;;  %v2066_v40 = vld [vmem:[%s4888_s4 + $0x128] sm:$0xff]  ;;  %v2068_v41 = vld [vmem:[%s4888_s4 + $0x138] sm:$0xff]  ;;  %v2065_v47 = vld [vmem:[%s4888_s4 + $0x120] sm:$0xff] }
 0x7b6   :  { %1933 = vmatmul.mubr.f32.vlgmr.msra.gmra.mrb[20].mxu0 %v1726_v2  ;;  %v2054_v2 = vld [vmem:[%s4888_s4 + $0xc8] sm:$0xff]  ;;  %v2067_v50 = vld [vmem:[%s4888_s4 + $0x130] sm:$0xff] }
 0x7b7   :  { %3355 = vmatpush1.bf16.msra.mxu1 %v3354_v55  ;;  %2224 = vmatprep.mubr.f32.mxu0 %v3561_v53  ;;  %v2056_v55 = vld [vmem:[%s4888_s4 + $0xd8] sm:$0xff] }
 0x7b8   :  { %3357 = vmatprep.subr.bf16.mxu1 %v3356_v10  ;;  %v3372_v10 = vpack.c.bf16 %v2056_v55, %v2054_v2  ;;  %v2070_v2 = vld [vmem:[%s4888_s4 + $0x148] sm:$0xff]  ;;  %v2072_v55 = vld [vmem:[%s4888_s4 + $0x158] sm:$0xff] }
 0x7bb   :  { %3359 = vmatpush1.bf16.msra.mxu1 %v3358_v32  ;;  %v3374_v32 = vpack.c.bf16 %v2055_v59, %v2053_v12  ;;  %v2069_v12 = vld [vmem:[%s4888_s4 + $0x140] sm:$0xff]  ;;  %v2071_v59 = vld [vmem:[%s4888_s4 + $0x150] sm:$0xff] }
 0x7bc   :  { %3361 = vmatprep.subr.bf16.mxu1 %v3360_v0  ;;  %v3376_v0 = vpack.c.bf16 %v2060_v20, %v2058_v19  ;;  %v2074_v19 = vld [vmem:[%s4888_s4 + $0x168] sm:$0xff]  ;;  %v2076_v20 = vld [vmem:[%s4888_s4 + $0x178] sm:$0xff] }
 0x7bf   :  { %3363 = vmatpush1.bf16.msra.mxu1 %v3362_v56  ;;  %v3378_v56 = vpack.c.bf16 %v2059_v27, %v2057_v25  ;;  %v2073_v25 = vld [vmem:[%s4888_s4 + $0x160] sm:$0xff]  ;;  %v2075_v27 = vld [vmem:[%s4888_s4 + $0x170] sm:$0xff] }
 0x7c0   :  { %3365 = vmatprep.subr.bf16.mxu1 %v3364_v34  ;;  %v3380_v34 = vpack.c.bf16 %v2064_v62, %v2062_v28  ;;  %v3394_v28 = vpack.c.bf16 %v2075_v27, %v2073_v25  ;;  %v2025_v62 = vld [vmem:[%s4879_s0] sm:$0xff] }
 0x7c3   :  { %3367 = vmatpush1.bf16.msra.mxu1 %v3366_v42  ;;  %v3382_v42 = vpack.c.bf16 %v2063_v15, %v2061_v9 }
 0x7c4   :  { %3369 = vmatprep.subr.bf16.mxu1 %v3368_v44  ;;  %v3384_v44 = vpack.c.bf16 %v2068_v41, %v2066_v40 }
 0x7c7   :  { %3371 = vmatpush1.bf16.msra.mxu1 %v3370_v3  ;;  %v3386_v3 = vpack.c.bf16 %v2067_v50, %v2065_v47 }
 0x7c8   :  { %3373 = vmatprep.subr.bf16.mxu1 %v3372_v10  ;;  %v3388_v10 = vpack.c.bf16 %v2072_v55, %v2070_v2 }
 0x7cb   :  { %3375 = vmatpush1.bf16.msra.mxu1 %v3374_v32  ;;  %v3390_v32 = vpack.c.bf16 %v2071_v59, %v2069_v12 }
 0x7cc   :  { %3377 = vmatprep.subr.bf16.mxu1 %v3376_v0  ;;  %v3392_v0 = vpack.c.bf16 %v2076_v20, %v2074_v19  ;;  %v3563_v19 = vmov 1966171168  }
 0x7cd   :  { %v1954_v20 = vunpack.c.l.s4 %v3563_v19 }
 0x7cf   :  { %3379 = vmatpush1.bf16.msra.mxu1 %v3378_v56  ;;  %v2028_v56 = vld [vmem:[%s4879_s0 + $0x18] sm:$0xff] }
 0x7d0   :  { %3381 = vmatprep.subr.bf16.mxu1 %v3380_v34  ;;  %v2027_v34 = vld [vmem:[%s4879_s0 + $0x10] sm:$0xff] }
 0x7d3   :  { %3383 = vmatpush1.bf16.msra.mxu1 %v3382_v42 }
 0x7d4   :  { %3385 = vmatprep.subr.bf16.mxu1 %v3384_v44 }
 0x7d7   :  { %3387 = vmatpush1.bf16.msra.mxu1 %v3386_v3 }
 0x7d8   :  { %3389 = vmatprep.subr.bf16.mxu1 %v3388_v10 }
 0x7db   :  { %3391 = vmatpush1.bf16.msra.mxu1 %v3390_v32  ;;  %v1955_v32 = vunpack.c.0.s8 %v1954_v20 }
 0x7dc   :  { %3393 = vmatprep.subr.bf16.mxu1 %v3392_v0 }
 0x7dd   :  { %v4756_v25 = vsub.s32 %v1955_v32, %v3927_v8 }
 0x7df   :  { %3395 = vmatpush1.bf16.msra.mxu1 %v3394_v28 }
 0x7e0   :  { %3469 = vmatprep.subr.bf16.mxu1 %v4228_v5 }
 0x7e2   :  { %2148 = vmatmul.mubr.f32.vlgmr.msra.gmra.mrb[24].mxu1 %v2025_v62 }
 0x7e3   :  { %2621 = vmatprep.mubr.msk.f32.mxu1 %vm90_vm0, %v2028_v56  ;;  %3471 = vmatpush1.bf16.msra.mxu1 %v4239_v13  ;;  %v1945_v56 = vld [vmem:[%s4889_s11] sm:$0x3] }
 0x7e4   :  { %3473 = vmatprep.subr.bf16.mxu1 %v4241_v14 }
 0x7e6   :  { %2154 = vmatmul.mubr.f32.gmra.mrb[26].mxu1 %v2027_v34 }
 0x7e7   :  { %3475 = vmatpush1.bf16.msra.mxu1 %v4258_v26 }
 0x7e8   :  { %3477 = vmatprep.subr.bf16.mxu1 %v4260_v29 }
 0x7eb   :  { %3479 = vmatpush1.bf16.msra.mxu1 %v4276_v21 }
 0x7ec   :  { %3481 = vmatprep.subr.bf16.mxu1 %v4278_v22 }
 0x7ef   :  { %3483 = vmatpush1.bf16.msra.mxu1 %v4294_v30 }
 0x7f0   :  { %3485 = vmatprep.subr.bf16.mxu1 %v4296_v31 }
 0x7f3   :  { %3487 = vmatpush1.bf16.msra.mxu1 %v4312_v33 }
 0x7f4   :  { %3489 = vmatprep.subr.bf16.mxu1 %v4314_v7 }
 0x7f7   :  { %3491 = vmatpush1.bf16.msra.mxu1 %v4330_v37 }
 0x7f8   :  { %3493 = vmatprep.subr.bf16.mxu1 %v4332_v38 }
 0x7fb   :  { %3495 = vmatpush1.bf16.msra.mxu1 %v4348_v43 }
 0x7fc   :  { %3497 = vmatprep.subr.bf16.mxu1 %v4350_v36 }
 0x7ff   :  { %3499 = vmatpush1.bf16.msra.mxu1 %v4366_v48 }
 0x800   :  { %3501 = vmatprep.subr.bf16.mxu1 %v4368_v49 }
 0x803   :  { %3503 = vmatpush1.bf16.msra.mxu1 %v4384_v57 }
 0x804   :  { %3505 = vmatprep.subr.bf16.mxu1 %v4386_v61 }
 0x807   :  { %3507 = vmatpush1.bf16.msra.mxu1 %v4402_v4 }
 0x808   :  { %3509 = vmatprep.subr.bf16.mxu1 %v4404_v58 }
 0x80b   :  { %3511 = vmatpush1.bf16.msra.mxu1 %v4420_v16 }
 0x80c   :  { %3513 = vmatprep.subr.bf16.mxu1 %v4422_v18 }
 0x80f   :  { %3515 = vmatpush1.bf16.msra.mxu1 %v4438_v35 }
 0x810   :  { %3517 = vmatprep.subr.bf16.mxu1 %v4440_v24 }
 0x813   :  { %3519 = vmatpush1.bf16.msra.mxu1 %v4456_v54 }
 0x814   :  { %3521 = vmatprep.subr.bf16.mxu1 %v4458_v1 }
 0x817   :  { %3523 = vmatpush1.bf16.msra.mxu1 %v4474_v17 }
 0x818   :  { %3525 = vmatprep.subr.bf16.mxu1 %v4476_v39 }
 0x81b   :  { %3527 = vmatpush1.bf16.msra.mxu1 %v4492_v45 }
 0x81c   :  { %3529 = vmatprep.subr.bf16.mxu1 %v4494_v46 }
 0x81f   :  { %3531 = vmatpush1.bf16.msra.mxu1 %v4504_v51 }
 0x885   :  { %v1861_v9 = vpop.f32.mrb[22].mxu1 }
 0x886   :  { %v1866_v15 = vmul.f32 0.0078125, %v1861_v9  ;;  %v1863_v40 = vpop.f32.mrb[23].mxu1  ;;  %v4764_v9 = vsub.s32 1, %v3927_v8  ;;  %v1969_v8 = vld [vmem:[%s4890_s12] sm:$0x3] }
 0x887   :  { %v1867_v41 = vmul.f32 0.0078125, %v1863_v40 }
 0x888   :  { %v1941_v44 = vmul.f32 %v1866_v15, %v1866_v15 }
 0x889   :  { %v1934_v42 = vpop.f32.mrb[20].mxu0  ;;  %v1942_v2 = vmul.f32 %v1867_v41, %v1867_v41 }
 0x88a   :  { %v1939_v47 = vmul.f32 0.0078125, %v1934_v42  ;;  %v1936_v50 = vpop.f32.mrb[21].mxu0 }
 0x88b   :  { %v1940_v55 = vmul.f32 0.0078125, %v1936_v50 }
 0x88c   :  { %v1943_v3 = vsub.f32 %v1939_v47, %v1941_v44 }
 0x88d   :  { %v1944_v10 = vsub.f32 %v1940_v55, %v1942_v2 }
 0x88e   :  { %v1946_v12 = vadd.f32 1e-05, %v1943_v3 }
 0x88f   :  { %v1947_v59 = vadd.f32 1e-05, %v1944_v10 }
 0x890   :  { %3551 = vrsqrt.f32 %v1946_v12 }
 0x891   :  { %3553 = vrsqrt.f32 %v1947_v59 }
 0x89a   :  { %v3552_v0 = vpop.eup %3551 }
 0x89b   :  { %v3554_v27 = vpop.eup %3553 }
 0x89c   :  { %v1952_v28 = vcombine.low %v3552_v0, %v3554_v27 }
 0x89e   :  { %v1959_v62 = vrot.slane %v1952_v28, %v4756_v25 }
 0x8a0   :  { %v1966_v34 = vrot.slane %v1959_v62, %v4756_v25 }
 0x8a2   :  { %v1968_v40 = vmul.f32 %v1966_v34, %v1945_v56 }
 0x8a4   :  { %v1974_v42 = vrot.slane %v1968_v40, %v3933_v11  ;;  %v1978_v44 = vrot.slane %v1968_v40, %v4764_v9 }
 0x8a6   :  { %v1981_v47 = vmul.f32 %v1974_v42, %v1866_v15  ;;  %v1982_v50 = vmul.f32 %v1978_v44, %v1867_v41  ;;  %v2002_v2 = vmul.f32 %v1974_v42, %v4507_v52  ;;  %v2003_v55 = vmul.f32 %v1978_v44, %v4509_v60 }
 0x8a7   :  { %v2004_v3 = vmul.f32 %v1974_v42, %v4511_v63  ;;  %v2005_v10 = vmul.f32 %v1978_v44, %v4519_v6 }
 0x8a8   :  { %v1985_v12 = vcombine.low %v1981_v47, %v1982_v50 }
 0x8aa   :  { %v1992_v59 = vrot.slane %v1985_v12, %v4756_v25 }
 0x8ac   :  { %v1999_v19 = vrot.slane %v1992_v59, %v4756_v25 }
 0x8ae   :  { %v2001_v20 = vsub.f32 %v1969_v8, %v1999_v19 }
 0x8b0   :  { %v2010_v15 = vrot.slane %v2001_v20, %v3933_v11  ;;  %v2014_v52 = vrot.slane %v2001_v20, %v4764_v9 }
 0x8b2   :  { %v4779_v41 = vadd.f32 %v2010_v15, %v2002_v2  ;;  %v4781_v60 = vadd.f32 %v2014_v52, %v2003_v55  ;;  %v4783_v63 = vadd.f32 %v2010_v15, %v2004_v3  ;;  %v4785_v6 = vadd.f32 %v2014_v52, %v2005_v10  ;;  %v2480_v55 = vld [vmem:[%s4892_s14] sm:$0x3] }
 0x8b4   :  { %v2021_v52 = vmax.f32 %v4779_v41, 0.0 }
 0x8b5   :  { %v4787_v32 = vpop.f32.mrb[24].mxu1 }
 0x8b6   :  { %v4789_v0 = vpop.f32.mrb[25].mxu1  ;;  %v2231_v28 = vmul.f32 %v4787_v32, %v4787_v32 }
 0x8b7   :  { %v2232_v40 = vmul.f32 %v4789_v0, %v4789_v0 }
 0x8b9   :  { %v4791_v27 = vpop.f32.mrb[26].mxu1 }
 0x8ba   :  { %v3398_v62 = vpack.c.bf16 %v4791_v27, %v4787_v32  ;;  %v2233_v56 = vmul.f32 %v4791_v27, %v4791_v27  ;;  %v4799_v34 = vpop.f32.mrb[27].mxu1 }
 0x8bb   :  { %v3396_v42 = vpack.c.bf16 %v4799_v34, %v4789_v0  ;;  %v2234_v44 = vmul.f32 %v4799_v34, %v4799_v34 }
 0x8bc   :  { %v3402_v47 = vpack.c.bf16 %v2233_v56, %v2231_v28 }
 0x8bd   :  { %3397 = vmatprep.subr.bf16.mxu0 %v3396_v42  ;;  %v3400_v50 = vpack.c.bf16 %v2234_v44, %v2232_v40 }
 0x8be   :  { %3399 = vmatpush1.bf16.msra.mxu0 %v3398_v62 }
 0x8bf   :  { %3401 = vmatprep.subr.bf16.mxu0 %v3400_v50 }
 0x8c1   :  { %2622 = vmatmul.mubr.msk.f32.vlgmr.msra.gmra.mrb[22].mxu0 %vm1166_vm5, %v3562_v23 }
 0x8c2   :  { %3403 = vmatpush1.bf16.msra.mxu0 %v3402_v47  ;;  %2299 = vmatprep.mubr.f32.mxu0 %v3561_v53 }
 0x8c3   :  { %3405 = vmatprep.subr.bf16.mxu0 %v4228_v5 }
 0x8c5   :  { %2623 = vmatmul.mubr.msk.f32.vlgmr.msra.gmra.mrb[24].mxu0 %vm1166_vm5, %v3562_v23 }
 0x8c6   :  { %3407 = vmatpush1.bf16.msra.mxu0 %v4239_v13 }
 0x8c7   :  { %3409 = vmatprep.subr.bf16.mxu0 %v4241_v14 }
 0x8ca   :  { %3411 = vmatpush1.bf16.msra.mxu0 %v4258_v26 }
 0x8cb   :  { %3413 = vmatprep.subr.bf16.mxu0 %v4260_v29 }
 0x8ce   :  { %3415 = vmatpush1.bf16.msra.mxu0 %v4276_v21 }
 0x8cf   :  { %3417 = vmatprep.subr.bf16.mxu0 %v4278_v22 }
 0x8d2   :  { %3419 = vmatpush1.bf16.msra.mxu0 %v4294_v30 }
 0x8d3   :  { %3421 = vmatprep.subr.bf16.mxu0 %v4296_v31 }
 0x8d6   :  { %3423 = vmatpush1.bf16.msra.mxu0 %v4312_v33 }
 0x8d7   :  { %3425 = vmatprep.subr.bf16.mxu0 %v4314_v7 }
 0x8da   :  { %3427 = vmatpush1.bf16.msra.mxu0 %v4330_v37 }
 0x8db   :  { %3429 = vmatprep.subr.bf16.mxu0 %v4332_v38 }
 0x8de   :  { %3431 = vmatpush1.bf16.msra.mxu0 %v4348_v43 }
 0x8df   :  { %3433 = vmatprep.subr.bf16.mxu0 %v4350_v36 }
 0x8e2   :  { %3435 = vmatpush1.bf16.msra.mxu0 %v4366_v48 }
 0x8e3   :  { %3437 = vmatprep.subr.bf16.mxu0 %v4368_v49 }
 0x8e6   :  { %3439 = vmatpush1.bf16.msra.mxu0 %v4384_v57 }
 0x8e7   :  { %3441 = vmatprep.subr.bf16.mxu0 %v4386_v61 }
 0x8ea   :  { %3443 = vmatpush1.bf16.msra.mxu0 %v4402_v4 }
 0x8eb   :  { %3445 = vmatprep.subr.bf16.mxu0 %v4404_v58  ;;  %v2456_v58 = vld [vmem:[%s4891_s13] sm:$0x3] }
 0x8ee   :  { %3447 = vmatpush1.bf16.msra.mxu0 %v4420_v16 }
 0x8ef   :  { %3449 = vmatprep.subr.bf16.mxu0 %v4422_v18 }
 0x8f2   :  { %3451 = vmatpush1.bf16.msra.mxu0 %v4438_v35 }
 0x8f3   :  { %3453 = vmatprep.subr.bf16.mxu0 %v4440_v24 }
 0x8f6   :  { %3455 = vmatpush1.bf16.msra.mxu0 %v4456_v54 }
 0x8f7   :  { %3457 = vmatprep.subr.bf16.mxu0 %v4458_v1 }
 0x8fa   :  { %3459 = vmatpush1.bf16.msra.mxu0 %v4474_v17 }
 0x8fb   :  { %3461 = vmatprep.subr.bf16.mxu0 %v4476_v39 }
 0x8fe   :  { %3463 = vmatpush1.bf16.msra.mxu0 %v4492_v45 }
 0x8ff   :  { %3465 = vmatprep.subr.bf16.mxu0 %v4494_v46 }
 0x902   :  { %3467 = vmatpush1.bf16.msra.mxu0 %v4504_v51 }
 0x994   :  { %v2226_v53 = vpop.f32.mrb[22].mxu0 }
 0x995   :  { %v2228_v23 = vpop.f32.mrb[23].mxu0 }
 0x996   :  { %2370 = vmatprep.mubr.f32.mxu0 %v2228_v23 }
 0x997   :  { %2371 = vmatmul.mubr.f32.vlgmr.msra.gmra.mrb[26].mxu0 %v2226_v53 }
 0x998   :  { %v2301_v5 = vpop.f32.mrb[24].mxu0 }
 0x999   :  { %v2303_v13 = vpop.f32.mrb[25].mxu0 }
 0x99a   :  { %2443 = vmatprep.mubr.f32.mxu1 %v2303_v13 }
 0x99b   :  { %2444 = vmatmul.mubr.f32.vlgmr.msra.gmra.mrb[28].mxu1 %v2301_v5 }
 0xa6a   :  { %v2372_v14 = vpop.f32.mrb[26].mxu0 }
 0xa6b   :  { %v2377_v26 = vmul.f32 0.0078125, %v2372_v14  ;;  %v2374_v29 = vpop.f32.mrb[27].mxu0 }
 0xa6c   :  { %v2378_v21 = vmul.f32 0.0078125, %v2374_v29 }
 0xa6d   :  { %v2452_v30 = vmul.f32 %v2377_v26, %v2377_v26 }
 0xa6e   :  { %v2445_v22 = vpop.f32.mrb[28].mxu1  ;;  %v2453_v7 = vmul.f32 %v2378_v21, %v2378_v21 }
 0xa6f   :  { %v2450_v31 = vmul.f32 0.0078125, %v2445_v22  ;;  %v2447_v33 = vpop.f32.mrb[29].mxu1 }
 0xa70   :  { %v2451_v37 = vmul.f32 0.0078125, %v2447_v33 }
 0xa71   :  { %v2454_v38 = vsub.f32 %v2450_v31, %v2452_v30 }
 0xa72   :  { %v2455_v43 = vsub.f32 %v2451_v37, %v2453_v7 }
 0xa73   :  { %v2457_v36 = vadd.f32 1e-05, %v2454_v38 }
 0xa74   :  { %v2458_v48 = vadd.f32 1e-05, %v2455_v43 }
 0xa75   :  { %3555 = vrsqrt.f32 %v2457_v36 }
 0xa76   :  { %3557 = vrsqrt.f32 %v2458_v48 }
 0xa7f   :  { %v3556_v49 = vpop.eup %3555 }
 0xa80   :  { %v3558_v57 = vpop.eup %3557 }
 0xa81   :  { %v2463_v61 = vcombine.low %v3556_v49, %v3558_v57 }
 0xa83   :  { %v2470_v4 = vrot.slane %v2463_v61, %v4756_v25 }
 0xa85   :  { %v2477_v16 = vrot.slane %v2470_v4, %v4756_v25 }
 0xa87   :  { %v2479_v18 = vmul.f32 %v2477_v16, %v2456_v58 }
 0xa89   :  { %v2485_v35 = vrot.slane %v2479_v18, %v3933_v11  ;;  %v2489_v24 = vrot.slane %v2479_v18, %v4764_v9 }
 0xa8b   :  { %v2492_v54 = vmul.f32 %v2485_v35, %v2377_v26  ;;  %v2493_v1 = vmul.f32 %v2489_v24, %v2378_v21  ;;  %v2513_v17 = vmul.f32 %v2485_v35, %v4787_v32  ;;  %v2514_v39 = vmul.f32 %v2489_v24, %v4789_v0 }
 0xa8c   :  { %v2515_v45 = vmul.f32 %v2485_v35, %v4791_v27  ;;  %v2516_v46 = vmul.f32 %v2489_v24, %v4799_v34  ;;  %v2022_v32 = vmax.f32 %v4781_v60, 0.0  ;;  %v2023_v0 = vmax.f32 %v4783_v63, 0.0 }
 0xa8d   :  { %v2496_v51 = vcombine.low %v2492_v54, %v2493_v1  ;;  %v2024_v27 = vmax.f32 %v4785_v6, 0.0 }
 0xa8f   :  { %v2503_v2 = vrot.slane %v2496_v51, %v4756_v25 }
 0xa91   :  { %v2510_v3 = vrot.slane %v2503_v2, %v4756_v25 }
 0xa93   :  { %v2512_v10 = vsub.f32 %v2480_v55, %v2510_v3 }
 0xa95   :  { %v2521_v12 = vrot.slane %v2512_v10, %v3933_v11  ;;  %v2525_v59 = vrot.slane %v2512_v10, %v4764_v9 }
 0xa97   :  { %v2528_v8 = vadd.f32 %v2521_v12, %v2513_v17  ;;  %v2529_v19 = vadd.f32 %v2525_v59, %v2514_v39  ;;  %v2530_v20 = vadd.f32 %v2521_v12, %v2515_v45  ;;  %v2531_v15 = vadd.f32 %v2525_v59, %v2516_v46 }
 0xa99   :  { %v2532_v28 = vmax.f32 %v2528_v8, 0.0  ;;  %v2533_v62 = vmax.f32 %v2529_v19, 0.0  ;;  %v2534_v25 = vmax.f32 %v2530_v20, 0.0  ;;  %v2535_v56 = vmax.f32 %v2531_v15, 0.0 }
 0xa9b   :  { %v2536_v34 = vadd.f32 %v2532_v28, %v2021_v52  ;;  %v2537_v11 = vadd.f32 %v2533_v62, %v2022_v32  ;;  %v2538_v40 = vadd.f32 %v2534_v25, %v2023_v0  ;;  %v2539_v9 = vadd.f32 %v2535_v56, %v2024_v27 }
 0xa9d   :  { %2540 = vst [vmem:[%s4893_s15] sm:$0xff] %v2536_v34  ;;  %2541 = vst [vmem:[%s4893_s15 + $0x8] sm:$0xff] %v2537_v11 }
 0xa9e   :  { %2542 = vst [vmem:[%s4893_s15 + $0x10] sm:$0xff] %v2538_v40  ;;  %2543 = vst [vmem:[%s4893_s15 + $0x18] sm:$0xff] %v2539_v9 }

</bundles_post_ra>
